<compile_context>
chip_gen: v6e
topology: v6e:2x2x1
jax: 0.10.0
libtpu: 0.0.40
codegen_flags: <defaults>
</compile_context>

<pallas_src>
import numpy as np

import jax
import jax.numpy as jnp
from jax.experimental import pallas as pl
from jax.experimental.pallas import tpu as pltpu


# Order of the prepared-weight operands passed to the kernel.
_WEIGHT_KEYS = ("k1", "b1t", "sr1e", "sr1o", "tc1e", "tc1o",
                "k2", "b2t", "sr2e", "sr2o", "tc2e", "tc2o",
                "wfc1", "bfc1", "wfc2", "bfc2", "wfc3", "bfc3")


# ---------------------------------------------------------------------------
# Fused Pallas kernel: one grid step == one image, everything in VMEM.
# ---------------------------------------------------------------------------
def _lenet_kernel(x_ref, k1, b1t, sr1e, sr1o, tc1e, tc1o,
                  k2, b2t, sr2e, sr2o, tc2e, tc2o,
                  wfc1, bfc1, wfc2, bfc2, wfc3, bfc3,
                  out_ref, p1_s, p2_s):
    f32 = jnp.float32

    # ---- conv1 (5x5, 1->6) + ReLU.  Output layout: (28 rows, lane = 6*col+oc).
    # Lowered to 5 banded matmuls over the width axis: sum_di x[di:di+28,:] @ K1_di
    acc1 = jnp.dot(x_ref[0:28, :], k1[0:32, :], preferred_element_type=f32)
    for di in range(1, 5):
        acc1 = acc1 + jnp.dot(x_ref[di:di + 28, :],
                              k1[di * 32:(di + 1) * 32, :],
                              preferred_element_type=f32)
    a1 = jnp.maximum(acc1 + b1t[...], 0.0)                       # (28, 168)

    # ---- 2x2 max-pool via exact 0/1 selection matmuls + elementwise max.
    rmax = jnp.maximum(jnp.dot(sr1e[...], a1, preferred_element_type=f32),
                       jnp.dot(sr1o[...], a1, preferred_element_type=f32))
    p1_s[...] = jnp.maximum(                                      # (14, 128), lane = 6*col+ic
        jnp.dot(rmax, tc1e[...], preferred_element_type=f32),
        jnp.dot(rmax, tc1o[...], preferred_element_type=f32))

    # ---- conv2 (5x5, 6->16) + ReLU.  Output layout: (10 rows, lane = 16*col+oc).
    acc2 = jnp.dot(p1_s[0:10, :], k2[0:128, :], preferred_element_type=f32)
    for di in range(1, 5):
        acc2 = acc2 + jnp.dot(p1_s[di:di + 10, :],
                              k2[di * 128:(di + 1) * 128, :],
                              preferred_element_type=f32)
    a2 = jnp.maximum(acc2 + b2t[...], 0.0)                       # (10, 160)

    # ---- 2x2 max-pool -> (5, 128), lane = 16*col + oc (lanes >= 80 are zero).
    rmax2 = jnp.maximum(jnp.dot(sr2e[...], a2, preferred_element_type=f32),
                        jnp.dot(sr2o[...], a2, preferred_element_type=f32))
    p2_s[...] = jnp.maximum(
        jnp.dot(rmax2, tc2e[...], preferred_element_type=f32),
        jnp.dot(rmax2, tc2o[...], preferred_element_type=f32))

    # ---- fc1 + ReLU (PyTorch NCHW flatten folded into wfc1 row permutation).
    h1 = bfc1[...]                                               # (1, 128)
    for h in range(5):
        h1 = h1 + jnp.dot(p2_s[h:h + 1, :],
                          wfc1[h * 128:(h + 1) * 128, :],
                          preferred_element_type=f32)
    h1 = jnp.maximum(h1, 0.0)

    # ---- fc2 + ReLU, fc3.  All operands 128-lane padded -> lane-dense stores.
    h2 = jnp.maximum(
        jnp.dot(h1, wfc2[...], preferred_element_type=f32) + bfc2[...], 0.0)
    out_ref[...] = jnp.dot(h2, wfc3[...], preferred_element_type=f32) + bfc3[...]


# ---------------------------------------------------------------------------
# Wrapper: one pallas_call, grid over batch ("parallel" for v7x megacore).
# ---------------------------------------------------------------------------
def net_forward(x_nchw, prep):
    """Forward pass of the PyTorch Net.  x_nchw: (N, 1, 32, 32) f32 -> (N, 10)."""
    n = x_nchw.shape[0]
    assert x_nchw.shape[1:] == (1, 32, 32), x_nchw.shape
    x = x_nchw.reshape(n, 32, 32).astype(jnp.float32)
    weights = [prep[k] for k in _WEIGHT_KEYS]

    in_specs = [pl.BlockSpec((None, 32, 32), lambda b: (b, 0, 0))]
    in_specs += [pl.BlockSpec(w.shape, lambda b: (0, 0)) for w in weights]

    out = pl.pallas_call(
        _lenet_kernel,
        out_shape=jax.ShapeDtypeStruct((n, 1, 128), jnp.float32),
        grid=(n,),
        in_specs=in_specs,
        out_specs=pl.BlockSpec((None, 1, 128), lambda b: (b, 0, 0)),
        scratch_shapes=[pltpu.VMEM((14, 128), jnp.float32),   # pooled conv1
                        pltpu.VMEM((5, 128), jnp.float32)],   # pooled conv2
        compiler_params=pltpu.CompilerParams(
            dimension_semantics=("parallel",),
            vmem_limit_bytes=32 * 1024 * 1024),
    )(x, *weights)
    return out.reshape(n, 128)[:, :10]


# ---------------------------------------------------------------------------
# One-time host-side weight preparation (Toeplitz conv matrices, pooling
# selection matrices, flatten permutation + 128-lane padding of the FC head).
# ---------------------------------------------------------------------------
def prepare_params(params):
    w1 = np.asarray(params["conv1_w"], np.float32)   # (6, 1, 5, 5)
    b1 = np.asarray(params["conv1_b"], np.float32)   # (6,)
    w2 = np.asarray(params["conv2_w"], np.float32)   # (16, 6, 5, 5)
    b2 = np.asarray(params["conv2_b"], np.float32)   # (16,)
    fw1 = np.asarray(params["fc1_w"], np.float32)    # (120, 400)
    fb1 = np.asarray(params["fc1_b"], np.float32)
    fw2 = np.asarray(params["fc2_w"], np.float32)    # (84, 120)
    fb2 = np.asarray(params["fc2_b"], np.float32)
    fw3 = np.asarray(params["fc3_w"], np.float32)    # (10, 84)
    fb3 = np.asarray(params["fc3_b"], np.float32)

    # conv1: K1[di][c, 6*j+oc] = w1[oc, 0, di, c-j] for 0 <= c-j < 5.
    k1 = np.zeros((5, 32, 168), np.float32)
    for di in range(5):
        for dj in range(5):
            for j in range(28):
                k1[di, j + dj, 6 * j:6 * j + 6] = w1[:, 0, di, dj]
    k1 = k1.reshape(5 * 32, 168)
    b1t = np.tile(b1, 28)[None, :]                   # (1, 168), lane = 6*j+oc

    # pool1 selections (rows: 28->14 even/odd; cols: lanes 12s+c -> 6s+c).
    sr1e = np.zeros((14, 28), np.float32)
    sr1o = np.zeros((14, 28), np.float32)
    for r in range(14):
        sr1e[r, 2 * r] = 1.0
        sr1o[r, 2 * r + 1] = 1.0
    tc1e = np.zeros((168, 128), np.float32)
    tc1o = np.zeros((168, 128), np.float32)
    for s in range(14):
        for c in range(6):
            tc1e[12 * s + c, 6 * s + c] = 1.0
            tc1o[12 * s + 6 + c, 6 * s + c] = 1.0

    # conv2: input lane = 6*w_in+ic (padded to 128); K2[di][6*w_in+ic, 16*j+oc]
    #        = w2[oc, ic, di, w_in-j] for 0 <= w_in-j < 5.
    k2 = np.zeros((5, 128, 160), np.float32)
    for di in range(5):
        for dj in range(5):
            for j in range(10):
                k2[di, 6 * (j + dj):6 * (j + dj) + 6,
                   16 * j:16 * j + 16] = w2[:, :, di, dj].T
    k2 = k2.reshape(5 * 128, 160)
    b2t = np.tile(b2, 10)[None, :]                   # (1, 160), lane = 16*j+oc

    # pool2 selections (rows: 10->5; cols: lanes 32s+oc -> 16s+oc).
    sr2e = np.zeros((5, 10), np.float32)
    sr2o = np.zeros((5, 10), np.float32)
    for r in range(5):
        sr2e[r, 2 * r] = 1.0
        sr2o[r, 2 * r + 1] = 1.0
    tc2e = np.zeros((160, 128), np.float32)
    tc2o = np.zeros((160, 128), np.float32)
    for s in range(5):
        for c in range(16):
            tc2e[32 * s + c, 16 * s + c] = 1.0
            tc2o[32 * s + 16 + c, 16 * s + c] = 1.0

    # fc1: PyTorch flatten index of (16,5,5) NCHW is 25*oc + 5*h + w; kernel
    # layout of pooled2 is [h, 16*w + oc] (lane-padded to 128 per h-block).
    wfc1 = np.zeros((5 * 128, 128), np.float32)
    for h in range(5):
        for w in range(5):
            cols = 25 * np.arange(16) + 5 * h + w
            wfc1[128 * h + 16 * w:128 * h + 16 * w + 16, :120] = fw1[:, cols].T
    bfc1 = np.zeros((1, 128), np.float32); bfc1[0, :120] = fb1
    wfc2 = np.zeros((128, 128), np.float32); wfc2[:120, :84] = fw2.T
    bfc2 = np.zeros((1, 128), np.float32); bfc2[0, :84] = fb2
    wfc3 = np.zeros((128, 128), np.float32); wfc3[:84, :10] = fw3.T
    bfc3 = np.zeros((1, 128), np.float32); bfc3[0, :10] = fb3

    vals = [k1, b1t, sr1e, sr1o, tc1e, tc1o, k2, b2t, sr2e, sr2o, tc2e, tc2o,
            wfc1, bfc1, wfc2, bfc2, wfc3, bfc3]
    return {name: jnp.asarray(v) for name, v in zip(_WEIGHT_KEYS, vals)}


# ---------------------------------------------------------------------------
# Pure-JAX reference (matches the PyTorch module) for validation.
# ---------------------------------------------------------------------------
def net_forward_ref(x_nchw, params):
    dn = ("NCHW", "OIHW", "NCHW")
    y = jax.lax.conv_general_dilated(x_nchw, params["conv1_w"], (1, 1), "VALID",
                                     dimension_numbers=dn)
    y = jnp.maximum(y + params["conv1_b"][None, :, None, None], 0.0)
    y = jax.lax.reduce_window(y, -jnp.inf, jax.lax.max,
                              (1, 1, 2, 2), (1, 1, 2, 2), "VALID")
    y = jax.lax.conv_general_dilated(y, params["conv2_w"], (1, 1), "VALID",
                                     dimension_numbers=dn)
    y = jnp.maximum(y + params["conv2_b"][None, :, None, None], 0.0)
    y = jax.lax.reduce_window(y, -jnp.inf, jax.lax.max,
                              (1, 1, 2, 2), (1, 1, 2, 2), "VALID")
    y = y.reshape(y.shape[0], -1)                      # NCHW flatten (16*5*5)
    y = jnp.maximum(y @ params["fc1_w"].T + params["fc1_b"], 0.0)
    y = jnp.maximum(y @ params["fc2_w"].T + params["fc2_b"], 0.0)
    return y @ params["fc3_w"].T + params["fc3_b"]


# ---------------------------------------------------------------------------
# Deterministic parameter init (PyTorch-default-style uniform +/- 1/sqrt(fan_in))
# ---------------------------------------------------------------------------
def init_params(key):
    def uniform(k, shape, fan_in):
        bound = 1.0 / jnp.sqrt(jnp.float32(fan_in))
        return jax.random.uniform(k, shape, jnp.float32, -bound, bound)

    ks = jax.random.split(key, 10)
    return {
        "conv1_w": uniform(ks[0], (6, 1, 5, 5), 1 * 5 * 5),
        "conv1_b": uniform(ks[1], (6,), 1 * 5 * 5),
        "conv2_w": uniform(ks[2], (16, 6, 5, 5), 6 * 5 * 5),
        "conv2_b": uniform(ks[3], (16,), 6 * 5 * 5),
        "fc1_w":  uniform(ks[4], (120, 400), 400),
        "fc1_b":  uniform(ks[5], (120,), 400),
        "fc2_w":  uniform(ks[6], (84, 120), 120),
        "fc2_b":  uniform(ks[7], (84,), 120),
        "fc3_w":  uniform(ks[8], (10, 84), 84),
        "fc3_b":  uniform(ks[9], (10,), 84),
    }


if __name__ == "__main__":
    key = jax.random.PRNGKey(0)
    k_x, k_p = jax.random.split(key)
    # LeNet requires 32x32 single-channel input so 16*5*5 = 400 features reach fc1.
    x = jax.random.normal(k_x, (2, 1, 32, 32), jnp.float32)
    params = init_params(k_p)
    prep = prepare_params(params)          # one-time host-side weight prep

    out = jax.jit(net_forward)(x, prep)
    out = jax.block_until_ready(out)

    ref = jax.block_until_ready(net_forward_ref(x, params))

    assert out.shape == (2, 10), out.shape
    assert bool(jnp.all(jnp.isfinite(out)))
    max_err = float(jnp.max(jnp.abs(out - ref)))
    assert max_err < 2e-3, f"mismatch vs reference: {max_err}"
    print("KERNEL_OK")
</pallas_src>

<mosaic_0001>
module attributes {stable_mosaic.version = 11 : i64} {
  func.func @_lenet_kernel(%arg0: i32, %arg1: memref<1x32x32xf32, #tpu.memory_space<vmem>>, %arg2: memref<160x168xf32, #tpu.memory_space<vmem>>, %arg3: memref<1x168xf32, #tpu.memory_space<vmem>>, %arg4: memref<14x28xf32, #tpu.memory_space<vmem>>, %arg5: memref<14x28xf32, #tpu.memory_space<vmem>>, %arg6: memref<168x128xf32, #tpu.memory_space<vmem>>, %arg7: memref<168x128xf32, #tpu.memory_space<vmem>>, %arg8: memref<640x160xf32, #tpu.memory_space<vmem>>, %arg9: memref<1x160xf32, #tpu.memory_space<vmem>>, %arg10: memref<5x10xf32, #tpu.memory_space<vmem>>, %arg11: memref<5x10xf32, #tpu.memory_space<vmem>>, %arg12: memref<160x128xf32, #tpu.memory_space<vmem>>, %arg13: memref<160x128xf32, #tpu.memory_space<vmem>>, %arg14: memref<640x128xf32, #tpu.memory_space<vmem>>, %arg15: memref<1x128xf32, #tpu.memory_space<vmem>>, %arg16: memref<128x128xf32, #tpu.memory_space<vmem>>, %arg17: memref<1x128xf32, #tpu.memory_space<vmem>>, %arg18: memref<128x128xf32, #tpu.memory_space<vmem>>, %arg19: memref<1x128xf32, #tpu.memory_space<vmem>>, %arg20: memref<1x1x128xf32, #tpu.memory_space<vmem>>, %arg21: memref<14x128xf32, #tpu.memory_space<vmem>>, %arg22: memref<5x128xf32, #tpu.memory_space<vmem>>) attributes {dimension_semantics = [#tpu.dimension_semantics<parallel>], iteration_bounds = array<i64: 2>, scalar_prefetch = 0 : i64, scratch_operands = 2 : i64, tpu.core_type = #tpu.core_type<tc>, window_params = [{transform_indices = @transform_0, window_bounds = array<i64: 1, 32, 32>}, {pipeline_mode = #tpu.pipeline_mode<synchronous>, transform_indices = @transform_1, window_bounds = array<i64: 160, 168>}, {pipeline_mode = #tpu.pipeline_mode<synchronous>, transform_indices = @transform_2, window_bounds = array<i64: 1, 168>}, {pipeline_mode = #tpu.pipeline_mode<synchronous>, transform_indices = @transform_3, window_bounds = array<i64: 14, 28>}, {pipeline_mode = #tpu.pipeline_mode<synchronous>, transform_indices = @transform_4, window_bounds = array<i64: 14, 28>}, {pipeline_mode = #tpu.pipeline_mode<synchronous>, transform_indices = @transform_5, window_bounds = array<i64: 168, 128>}, {pipeline_mode = #tpu.pipeline_mode<synchronous>, transform_indices = @transform_6, window_bounds = array<i64: 168, 128>}, {pipeline_mode = #tpu.pipeline_mode<synchronous>, transform_indices = @transform_7, window_bounds = array<i64: 640, 160>}, {pipeline_mode = #tpu.pipeline_mode<synchronous>, transform_indices = @transform_8, window_bounds = array<i64: 1, 160>}, {pipeline_mode = #tpu.pipeline_mode<synchronous>, transform_indices = @transform_9, window_bounds = array<i64: 5, 10>}, {pipeline_mode = #tpu.pipeline_mode<synchronous>, transform_indices = @transform_10, window_bounds = array<i64: 5, 10>}, {pipeline_mode = #tpu.pipeline_mode<synchronous>, transform_indices = @transform_11, window_bounds = array<i64: 160, 128>}, {pipeline_mode = #tpu.pipeline_mode<synchronous>, transform_indices = @transform_12, window_bounds = array<i64: 160, 128>}, {pipeline_mode = #tpu.pipeline_mode<synchronous>, transform_indices = @transform_13, window_bounds = array<i64: 640, 128>}, {pipeline_mode = #tpu.pipeline_mode<synchronous>, transform_indices = @transform_14, window_bounds = array<i64: 1, 128>}, {pipeline_mode = #tpu.pipeline_mode<synchronous>, transform_indices = @transform_15, window_bounds = array<i64: 128, 128>}, {pipeline_mode = #tpu.pipeline_mode<synchronous>, transform_indices = @transform_16, window_bounds = array<i64: 1, 128>}, {pipeline_mode = #tpu.pipeline_mode<synchronous>, transform_indices = @transform_17, window_bounds = array<i64: 128, 128>}, {pipeline_mode = #tpu.pipeline_mode<synchronous>, transform_indices = @transform_18, window_bounds = array<i64: 1, 128>}, {transform_indices = @transform_19, window_bounds = array<i64: 1, 1, 128>}]} {
    %c0 = arith.constant 0 : index
    %c0_0 = arith.constant 0 : index
    %c0_1 = arith.constant 0 : index
    %0 = vector.load %arg1[%c0, %c0_0, %c0_1] : memref<1x32x32xf32, #tpu.memory_space<vmem>>, vector<1x28x32xf32>
    %1 = vector.shape_cast %0 : vector<1x28x32xf32> to vector<28x32xf32>
    %c0_2 = arith.constant 0 : index
    %c0_3 = arith.constant 0 : index
    %2 = vector.load %arg2[%c0_2, %c0_3] : memref<160x168xf32, #tpu.memory_space<vmem>>, vector<32x168xf32>
    %cst = arith.constant dense<0.000000e+00> : vector<28x168xf32>
    %3 = tpu.matmul %1, %2, %cst {dimension_numbers = #tpu.dot_dimension_numbers<[1], [0], [0], [1], [0, 0, 1, 1], [], []>} : vector<28x32xf32>, vector<32x168xf32>, vector<28x168xf32> -> vector<28x168xf32>
    %c0_4 = arith.constant 0 : index
    %c1 = arith.constant 1 : index
    %c0_5 = arith.constant 0 : index
    %4 = vector.load %arg1[%c0_4, %c1, %c0_5] : memref<1x32x32xf32, #tpu.memory_space<vmem>>, vector<1x28x32xf32>
    %5 = vector.shape_cast %4 : vector<1x28x32xf32> to vector<28x32xf32>
    %c32 = arith.constant 32 : index
    %c0_6 = arith.constant 0 : index
    %6 = vector.load %arg2[%c32, %c0_6] : memref<160x168xf32, #tpu.memory_space<vmem>>, vector<32x168xf32>
    %cst_7 = arith.constant dense<0.000000e+00> : vector<28x168xf32>
    %7 = tpu.matmul %5, %6, %cst_7 {dimension_numbers = #tpu.dot_dimension_numbers<[1], [0], [0], [1], [0, 0, 1, 1], [], []>} : vector<28x32xf32>, vector<32x168xf32>, vector<28x168xf32> -> vector<28x168xf32>
    %8 = arith.addf %3, %7 : vector<28x168xf32>
    %c0_8 = arith.constant 0 : index
    %c2 = arith.constant 2 : index
    %c0_9 = arith.constant 0 : index
    %9 = vector.load %arg1[%c0_8, %c2, %c0_9] : memref<1x32x32xf32, #tpu.memory_space<vmem>>, vector<1x28x32xf32>
    %10 = vector.shape_cast %9 : vector<1x28x32xf32> to vector<28x32xf32>
    %c64 = arith.constant 64 : index
    %c0_10 = arith.constant 0 : index
    %11 = vector.load %arg2[%c64, %c0_10] : memref<160x168xf32, #tpu.memory_space<vmem>>, vector<32x168xf32>
    %cst_11 = arith.constant dense<0.000000e+00> : vector<28x168xf32>
    %12 = tpu.matmul %10, %11, %cst_11 {dimension_numbers = #tpu.dot_dimension_numbers<[1], [0], [0], [1], [0, 0, 1, 1], [], []>} : vector<28x32xf32>, vector<32x168xf32>, vector<28x168xf32> -> vector<28x168xf32>
    %13 = arith.addf %8, %12 : vector<28x168xf32>
    %c0_12 = arith.constant 0 : index
    %c3 = arith.constant 3 : index
    %c0_13 = arith.constant 0 : index
    %14 = vector.load %arg1[%c0_12, %c3, %c0_13] : memref<1x32x32xf32, #tpu.memory_space<vmem>>, vector<1x28x32xf32>
    %15 = vector.shape_cast %14 : vector<1x28x32xf32> to vector<28x32xf32>
    %c96 = arith.constant 96 : index
    %c0_14 = arith.constant 0 : index
    %16 = vector.load %arg2[%c96, %c0_14] : memref<160x168xf32, #tpu.memory_space<vmem>>, vector<32x168xf32>
    %cst_15 = arith.constant dense<0.000000e+00> : vector<28x168xf32>
    %17 = tpu.matmul %15, %16, %cst_15 {dimension_numbers = #tpu.dot_dimension_numbers<[1], [0], [0], [1], [0, 0, 1, 1], [], []>} : vector<28x32xf32>, vector<32x168xf32>, vector<28x168xf32> -> vector<28x168xf32>
    %18 = arith.addf %13, %17 : vector<28x168xf32>
    %c0_16 = arith.constant 0 : index
    %c4 = arith.constant 4 : index
    %c0_17 = arith.constant 0 : index
    %19 = vector.load %arg1[%c0_16, %c4, %c0_17] : memref<1x32x32xf32, #tpu.memory_space<vmem>>, vector<1x28x32xf32>
    %20 = vector.shape_cast %19 : vector<1x28x32xf32> to vector<28x32xf32>
    %c128 = arith.constant 128 : index
    %c0_18 = arith.constant 0 : index
    %21 = vector.load %arg2[%c128, %c0_18] : memref<160x168xf32, #tpu.memory_space<vmem>>, vector<32x168xf32>
    %cst_19 = arith.constant dense<0.000000e+00> : vector<28x168xf32>
    %22 = tpu.matmul %20, %21, %cst_19 {dimension_numbers = #tpu.dot_dimension_numbers<[1], [0], [0], [1], [0, 0, 1, 1], [], []>} : vector<28x32xf32>, vector<32x168xf32>, vector<28x168xf32> -> vector<28x168xf32>
    %23 = arith.addf %18, %22 : vector<28x168xf32>
    %c0_20 = arith.constant 0 : index
    %c0_21 = arith.constant 0 : index
    %24 = vector.load %arg3[%c0_20, %c0_21] : memref<1x168xf32, #tpu.memory_space<vmem>>, vector<1x168xf32>
    %25 = vector.broadcast %24 : vector<1x168xf32> to vector<28x168xf32>
    %26 = arith.addf %23, %25 : vector<28x168xf32>
    %cst_22 = arith.constant 0.000000e+00 : f32
    %27 = vector.broadcast %cst_22 : f32 to vector<28x168xf32>
    %28 = arith.maximumf %26, %27 : vector<28x168xf32>
    %c0_23 = arith.constant 0 : index
    %c0_24 = arith.constant 0 : index
    %29 = vector.load %arg4[%c0_23, %c0_24] : memref<14x28xf32, #tpu.memory_space<vmem>>, vector<14x28xf32>
    %cst_25 = arith.constant dense<0.000000e+00> : vector<14x168xf32>
    %30 = tpu.matmul %29, %28, %cst_25 {dimension_numbers = #tpu.dot_dimension_numbers<[1], [0], [0], [1], [0, 0, 1, 1], [], []>} : vector<14x28xf32>, vector<28x168xf32>, vector<14x168xf32> -> vector<14x168xf32>
    %c0_26 = arith.constant 0 : index
    %c0_27 = arith.constant 0 : index
    %31 = vector.load %arg5[%c0_26, %c0_27] : memref<14x28xf32, #tpu.memory_space<vmem>>, vector<14x28xf32>
    %cst_28 = arith.constant dense<0.000000e+00> : vector<14x168xf32>
    %32 = tpu.matmul %31, %28, %cst_28 {dimension_numbers = #tpu.dot_dimension_numbers<[1], [0], [0], [1], [0, 0, 1, 1], [], []>} : vector<14x28xf32>, vector<28x168xf32>, vector<14x168xf32> -> vector<14x168xf32>
    %33 = arith.maximumf %30, %32 : vector<14x168xf32>
    %c0_29 = arith.constant 0 : index
    %c0_30 = arith.constant 0 : index
    %34 = vector.load %arg6[%c0_29, %c0_30] : memref<168x128xf32, #tpu.memory_space<vmem>>, vector<168x128xf32>
    %cst_31 = arith.constant dense<0.000000e+00> : vector<14x128xf32>
    %35 = tpu.matmul %33, %34, %cst_31 {dimension_numbers = #tpu.dot_dimension_numbers<[1], [0], [0], [1], [0, 0, 1, 1], [], []>} : vector<14x168xf32>, vector<168x128xf32>, vector<14x128xf32> -> vector<14x128xf32>
    %c0_32 = arith.constant 0 : index
    %c0_33 = arith.constant 0 : index
    %36 = vector.load %arg7[%c0_32, %c0_33] : memref<168x128xf32, #tpu.memory_space<vmem>>, vector<168x128xf32>
    %cst_34 = arith.constant dense<0.000000e+00> : vector<14x128xf32>
    %37 = tpu.matmul %33, %36, %cst_34 {dimension_numbers = #tpu.dot_dimension_numbers<[1], [0], [0], [1], [0, 0, 1, 1], [], []>} : vector<14x168xf32>, vector<168x128xf32>, vector<14x128xf32> -> vector<14x128xf32>
    %38 = arith.maximumf %35, %37 : vector<14x128xf32>
    %c0_35 = arith.constant 0 : index
    %c0_36 = arith.constant 0 : index
    %39 = vector.load %arg21[%c0_35, %c0_36] : memref<14x128xf32, #tpu.memory_space<vmem>>, vector<14x128xf32>
    tpu.vector_store %arg21[%c0_35, %c0_36], %38 {strides = array<i32>} : memref<14x128xf32, #tpu.memory_space<vmem>>, vector<14x128xf32>,
    %c0_37 = arith.constant 0 : index
    %c0_38 = arith.constant 0 : index
    %40 = vector.load %arg21[%c0_37, %c0_38] : memref<14x128xf32, #tpu.memory_space<vmem>>, vector<10x128xf32>
    %c0_39 = arith.constant 0 : index
    %c0_40 = arith.constant 0 : index
    %41 = vector.load %arg8[%c0_39, %c0_40] : memref<640x160xf32, #tpu.memory_space<vmem>>, vector<128x160xf32>
    %cst_41 = arith.constant dense<0.000000e+00> : vector<10x160xf32>
    %42 = tpu.matmul %40, %41, %cst_41 {dimension_numbers = #tpu.dot_dimension_numbers<[1], [0], [0], [1], [0, 0, 1, 1], [], []>} : vector<10x128xf32>, vector<128x160xf32>, vector<10x160xf32> -> vector<10x160xf32>
    %c1_42 = arith.constant 1 : index
    %c0_43 = arith.constant 0 : index
    %43 = vector.load %arg21[%c1_42, %c0_43] : memref<14x128xf32, #tpu.memory_space<vmem>>, vector<10x128xf32>
    %c128_44 = arith.constant 128 : index
    %c0_45 = arith.constant 0 : index
    %44 = vector.load %arg8[%c128_44, %c0_45] : memref<640x160xf32, #tpu.memory_space<vmem>>, vector<128x160xf32>
    %cst_46 = arith.constant dense<0.000000e+00> : vector<10x160xf32>
    %45 = tpu.matmul %43, %44, %cst_46 {dimension_numbers = #tpu.dot_dimension_numbers<[1], [0], [0], [1], [0, 0, 1, 1], [], []>} : vector<10x128xf32>, vector<128x160xf32>, vector<10x160xf32> -> vector<10x160xf32>
    %46 = arith.addf %42, %45 : vector<10x160xf32>
    %c2_47 = arith.constant 2 : index
    %c0_48 = arith.constant 0 : index
    %47 = vector.load %arg21[%c2_47, %c0_48] : memref<14x128xf32, #tpu.memory_space<vmem>>, vector<10x128xf32>
    %c256 = arith.constant 256 : index
    %c0_49 = arith.constant 0 : index
    %48 = vector.load %arg8[%c256, %c0_49] : memref<640x160xf32, #tpu.memory_space<vmem>>, vector<128x160xf32>
    %cst_50 = arith.constant dense<0.000000e+00> : vector<10x160xf32>
    %49 = tpu.matmul %47, %48, %cst_50 {dimension_numbers = #tpu.dot_dimension_numbers<[1], [0], [0], [1], [0, 0, 1, 1], [], []>} : vector<10x128xf32>, vector<128x160xf32>, vector<10x160xf32> -> vector<10x160xf32>
    %50 = arith.addf %46, %49 : vector<10x160xf32>
    %c3_51 = arith.constant 3 : index
    %c0_52 = arith.constant 0 : index
    %51 = vector.load %arg21[%c3_51, %c0_52] : memref<14x128xf32, #tpu.memory_space<vmem>>, vector<10x128xf32>
    %c384 = arith.constant 384 : index
    %c0_53 = arith.constant 0 : index
    %52 = vector.load %arg8[%c384, %c0_53] : memref<640x160xf32, #tpu.memory_space<vmem>>, vector<128x160xf32>
    %cst_54 = arith.constant dense<0.000000e+00> : vector<10x160xf32>
    %53 = tpu.matmul %51, %52, %cst_54 {dimension_numbers = #tpu.dot_dimension_numbers<[1], [0], [0], [1], [0, 0, 1, 1], [], []>} : vector<10x128xf32>, vector<128x160xf32>, vector<10x160xf32> -> vector<10x160xf32>
    %54 = arith.addf %50, %53 : vector<10x160xf32>
    %c4_55 = arith.constant 4 : index
    %c0_56 = arith.constant 0 : index
    %55 = vector.load %arg21[%c4_55, %c0_56] : memref<14x128xf32, #tpu.memory_space<vmem>>, vector<10x128xf32>
    %c512 = arith.constant 512 : index
    %c0_57 = arith.constant 0 : index
    %56 = vector.load %arg8[%c512, %c0_57] : memref<640x160xf32, #tpu.memory_space<vmem>>, vector<128x160xf32>
    %cst_58 = arith.constant dense<0.000000e+00> : vector<10x160xf32>
    %57 = tpu.matmul %55, %56, %cst_58 {dimension_numbers = #tpu.dot_dimension_numbers<[1], [0], [0], [1], [0, 0, 1, 1], [], []>} : vector<10x128xf32>, vector<128x160xf32>, vector<10x160xf32> -> vector<10x160xf32>
    %58 = arith.addf %54, %57 : vector<10x160xf32>
    %c0_59 = arith.constant 0 : index
    %c0_60 = arith.constant 0 : index
    %59 = vector.load %arg9[%c0_59, %c0_60] : memref<1x160xf32, #tpu.memory_space<vmem>>, vector<1x160xf32>
    %60 = vector.broadcast %59 : vector<1x160xf32> to vector<10x160xf32>
    %61 = arith.addf %58, %60 : vector<10x160xf32>
    %cst_61 = arith.constant 0.000000e+00 : f32
    %62 = vector.broadcast %cst_61 : f32 to vector<10x160xf32>
    %63 = arith.maximumf %61, %62 : vector<10x160xf32>
    %c0_62 = arith.constant 0 : index
    %c0_63 = arith.constant 0 : index
    %64 = vector.load %arg10[%c0_62, %c0_63] : memref<5x10xf32, #tpu.memory_space<vmem>>, vector<5x10xf32>
    %cst_64 = arith.constant dense<0.000000e+00> : vector<5x160xf32>
    %65 = tpu.matmul %64, %63, %cst_64 {dimension_numbers = #tpu.dot_dimension_numbers<[1], [0], [0], [1], [0, 0, 1, 1], [], []>} : vector<5x10xf32>, vector<10x160xf32>, vector<5x160xf32> -> vector<5x160xf32>
    %c0_65 = arith.constant 0 : index
    %c0_66 = arith.constant 0 : index
    %66 = vector.load %arg11[%c0_65, %c0_66] : memref<5x10xf32, #tpu.memory_space<vmem>>, vector<5x10xf32>
    %cst_67 = arith.constant dense<0.000000e+00> : vector<5x160xf32>
    %67 = tpu.matmul %66, %63, %cst_67 {dimension_numbers = #tpu.dot_dimension_numbers<[1], [0], [0], [1], [0, 0, 1, 1], [], []>} : vector<5x10xf32>, vector<10x160xf32>, vector<5x160xf32> -> vector<5x160xf32>
    %68 = arith.maximumf %65, %67 : vector<5x160xf32>
    %c0_68 = arith.constant 0 : index
    %c0_69 = arith.constant 0 : index
    %69 = vector.load %arg12[%c0_68, %c0_69] : memref<160x128xf32, #tpu.memory_space<vmem>>, vector<160x128xf32>
    %cst_70 = arith.constant dense<0.000000e+00> : vector<5x128xf32>
    %70 = tpu.matmul %68, %69, %cst_70 {dimension_numbers = #tpu.dot_dimension_numbers<[1], [0], [0], [1], [0, 0, 1, 1], [], []>} : vector<5x160xf32>, vector<160x128xf32>, vector<5x128xf32> -> vector<5x128xf32>
    %c0_71 = arith.constant 0 : index
    %c0_72 = arith.constant 0 : index
    %71 = vector.load %arg13[%c0_71, %c0_72] : memref<160x128xf32, #tpu.memory_space<vmem>>, vector<160x128xf32>
    %cst_73 = arith.constant dense<0.000000e+00> : vector<5x128xf32>
    %72 = tpu.matmul %68, %71, %cst_73 {dimension_numbers = #tpu.dot_dimension_numbers<[1], [0], [0], [1], [0, 0, 1, 1], [], []>} : vector<5x160xf32>, vector<160x128xf32>, vector<5x128xf32> -> vector<5x128xf32>
    %73 = arith.maximumf %70, %72 : vector<5x128xf32>
    %c0_74 = arith.constant 0 : index
    %c0_75 = arith.constant 0 : index
    %74 = vector.load %arg22[%c0_74, %c0_75] : memref<5x128xf32, #tpu.memory_space<vmem>>, vector<5x128xf32>
    tpu.vector_store %arg22[%c0_74, %c0_75], %73 {strides = array<i32>} : memref<5x128xf32, #tpu.memory_space<vmem>>, vector<5x128xf32>,
    %c0_76 = arith.constant 0 : index
    %c0_77 = arith.constant 0 : index
    %75 = vector.load %arg15[%c0_76, %c0_77] : memref<1x128xf32, #tpu.memory_space<vmem>>, vector<1x128xf32>
    %c0_78 = arith.constant 0 : index
    %c0_79 = arith.constant 0 : index
    %76 = vector.load %arg22[%c0_78, %c0_79] : memref<5x128xf32, #tpu.memory_space<vmem>>, vector<1x128xf32>
    %c0_80 = arith.constant 0 : index
    %c0_81 = arith.constant 0 : index
    %77 = vector.load %arg14[%c0_80, %c0_81] : memref<640x128xf32, #tpu.memory_space<vmem>>, vector<128x128xf32>
    %cst_82 = arith.constant dense<0.000000e+00> : vector<1x128xf32>
    %78 = tpu.matmul %76, %77, %cst_82 {dimension_numbers = #tpu.dot_dimension_numbers<[1], [0], [0], [1], [0, 0, 1, 1], [], []>} : vector<1x128xf32>, vector<128x128xf32>, vector<1x128xf32> -> vector<1x128xf32>
    %79 = arith.addf %75, %78 : vector<1x128xf32>
    %c1_83 = arith.constant 1 : index
    %c0_84 = arith.constant 0 : index
    %80 = vector.load %arg22[%c1_83, %c0_84] : memref<5x128xf32, #tpu.memory_space<vmem>>, vector<1x128xf32>
    %c128_85 = arith.constant 128 : index
    %c0_86 = arith.constant 0 : index
    %81 = vector.load %arg14[%c128_85, %c0_86] : memref<640x128xf32, #tpu.memory_space<vmem>>, vector<128x128xf32>
    %cst_87 = arith.constant dense<0.000000e+00> : vector<1x128xf32>
    %82 = tpu.matmul %80, %81, %cst_87 {dimension_numbers = #tpu.dot_dimension_numbers<[1], [0], [0], [1], [0, 0, 1, 1], [], []>} : vector<1x128xf32>, vector<128x128xf32>, vector<1x128xf32> -> vector<1x128xf32>
    %83 = arith.addf %79, %82 : vector<1x128xf32>
    %c2_88 = arith.constant 2 : index
    %c0_89 = arith.constant 0 : index
    %84 = vector.load %arg22[%c2_88, %c0_89] : memref<5x128xf32, #tpu.memory_space<vmem>>, vector<1x128xf32>
    %c256_90 = arith.constant 256 : index
    %c0_91 = arith.constant 0 : index
    %85 = vector.load %arg14[%c256_90, %c0_91] : memref<640x128xf32, #tpu.memory_space<vmem>>, vector<128x128xf32>
    %cst_92 = arith.constant dense<0.000000e+00> : vector<1x128xf32>
    %86 = tpu.matmul %84, %85, %cst_92 {dimension_numbers = #tpu.dot_dimension_numbers<[1], [0], [0], [1], [0, 0, 1, 1], [], []>} : vector<1x128xf32>, vector<128x128xf32>, vector<1x128xf32> -> vector<1x128xf32>
    %87 = arith.addf %83, %86 : vector<1x128xf32>
    %c3_93 = arith.constant 3 : index
    %c0_94 = arith.constant 0 : index
    %88 = vector.load %arg22[%c3_93, %c0_94] : memref<5x128xf32, #tpu.memory_space<vmem>>, vector<1x128xf32>
    %c384_95 = arith.constant 384 : index
    %c0_96 = arith.constant 0 : index
    %89 = vector.load %arg14[%c384_95, %c0_96] : memref<640x128xf32, #tpu.memory_space<vmem>>, vector<128x128xf32>
    %cst_97 = arith.constant dense<0.000000e+00> : vector<1x128xf32>
    %90 = tpu.matmul %88, %89, %cst_97 {dimension_numbers = #tpu.dot_dimension_numbers<[1], [0], [0], [1], [0, 0, 1, 1], [], []>} : vector<1x128xf32>, vector<128x128xf32>, vector<1x128xf32> -> vector<1x128xf32>
    %91 = arith.addf %87, %90 : vector<1x128xf32>
    %c4_98 = arith.constant 4 : index
    %c0_99 = arith.constant 0 : index
    %92 = vector.load %arg22[%c4_98, %c0_99] : memref<5x128xf32, #tpu.memory_space<vmem>>, vector<1x128xf32>
    %c512_100 = arith.constant 512 : index
    %c0_101 = arith.constant 0 : index
    %93 = vector.load %arg14[%c512_100, %c0_101] : memref<640x128xf32, #tpu.memory_space<vmem>>, vector<128x128xf32>
    %cst_102 = arith.constant dense<0.000000e+00> : vector<1x128xf32>
    %94 = tpu.matmul %92, %93, %cst_102 {dimension_numbers = #tpu.dot_dimension_numbers<[1], [0], [0], [1], [0, 0, 1, 1], [], []>} : vector<1x128xf32>, vector<128x128xf32>, vector<1x128xf32> -> vector<1x128xf32>
    %95 = arith.addf %91, %94 : vector<1x128xf32>
    %cst_103 = arith.constant 0.000000e+00 : f32
    %96 = vector.broadcast %cst_103 : f32 to vector<1x128xf32>
    %97 = arith.maximumf %95, %96 : vector<1x128xf32>
    %c0_104 = arith.constant 0 : index
    %c0_105 = arith.constant 0 : index
    %98 = vector.load %arg16[%c0_104, %c0_105] : memref<128x128xf32, #tpu.memory_space<vmem>>, vector<128x128xf32>
    %cst_106 = arith.constant dense<0.000000e+00> : vector<1x128xf32>
    %99 = tpu.matmul %97, %98, %cst_106 {dimension_numbers = #tpu.dot_dimension_numbers<[1], [0], [0], [1], [0, 0, 1, 1], [], []>} : vector<1x128xf32>, vector<128x128xf32>, vector<1x128xf32> -> vector<1x128xf32>
    %c0_107 = arith.constant 0 : index
    %c0_108 = arith.constant 0 : index
    %100 = vector.load %arg17[%c0_107, %c0_108] : memref<1x128xf32, #tpu.memory_space<vmem>>, vector<1x128xf32>
    %101 = arith.addf %99, %100 : vector<1x128xf32>
    %cst_109 = arith.constant 0.000000e+00 : f32
    %102 = vector.broadcast %cst_109 : f32 to vector<1x128xf32>
    %103 = arith.maximumf %101, %102 : vector<1x128xf32>
    %c0_110 = arith.constant 0 : index
    %c0_111 = arith.constant 0 : index
    %104 = vector.load %arg18[%c0_110, %c0_111] : memref<128x128xf32, #tpu.memory_space<vmem>>, vector<128x128xf32>
    %cst_112 = arith.constant dense<0.000000e+00> : vector<1x128xf32>
    %105 = tpu.matmul %103, %104, %cst_112 {dimension_numbers = #tpu.dot_dimension_numbers<[1], [0], [0], [1], [0, 0, 1, 1], [], []>} : vector<1x128xf32>, vector<128x128xf32>, vector<1x128xf32> -> vector<1x128xf32>
    %c0_113 = arith.constant 0 : index
    %c0_114 = arith.constant 0 : index
    %106 = vector.load %arg19[%c0_113, %c0_114] : memref<1x128xf32, #tpu.memory_space<vmem>>, vector<1x128xf32>
    %107 = arith.addf %105, %106 : vector<1x128xf32>
    %c0_115 = arith.constant 0 : index
    %c0_116 = arith.constant 0 : index
    %c0_117 = arith.constant 0 : index
    %108 = vector.load %arg20[%c0_115, %c0_116, %c0_117] : memref<1x1x128xf32, #tpu.memory_space<vmem>>, vector<1x1x128xf32>
    %109 = vector.shape_cast %108 : vector<1x1x128xf32> to vector<1x128xf32>
    %110 = vector.shape_cast %107 : vector<1x128xf32> to vector<1x1x128xf32>
    tpu.vector_store %arg20[%c0_115, %c0_116, %c0_117], %110 {strides = array<i32>} : memref<1x1x128xf32, #tpu.memory_space<vmem>>, vector<1x1x128xf32>,
    return
  }
  func.func @transform_0(%arg0: i32) -> (i32, i32, i32) {
    %c0_i32 = arith.constant 0 : i32
    %c0_i32_0 = arith.constant 0 : i32
    %c0_i32_1 = arith.constant 0 : i32
    return %arg0, %c0_i32, %c0_i32_0 : i32, i32, i32
  }
  func.func @transform_1(%arg0: i32) -> (i32, i32) {
    %c0_i32 = arith.constant 0 : i32
    %c0_i32_0 = arith.constant 0 : i32
    %c0_i32_1 = arith.constant 0 : i32
    return %c0_i32, %c0_i32_0 : i32, i32
  }
  func.func @transform_2(%arg0: i32) -> (i32, i32) {
    %c0_i32 = arith.constant 0 : i32
    %c0_i32_0 = arith.constant 0 : i32
    %c0_i32_1 = arith.constant 0 : i32
    return %c0_i32, %c0_i32_0 : i32, i32
  }
  func.func @transform_3(%arg0: i32) -> (i32, i32) {
    %c0_i32 = arith.constant 0 : i32
    %c0_i32_0 = arith.constant 0 : i32
    %c0_i32_1 = arith.constant 0 : i32
    return %c0_i32, %c0_i32_0 : i32, i32
  }
  func.func @transform_4(%arg0: i32) -> (i32, i32) {
    %c0_i32 = arith.constant 0 : i32
    %c0_i32_0 = arith.constant 0 : i32
    %c0_i32_1 = arith.constant 0 : i32
    return %c0_i32, %c0_i32_0 : i32, i32
  }
  func.func @transform_5(%arg0: i32) -> (i32, i32) {
    %c0_i32 = arith.constant 0 : i32
    %c0_i32_0 = arith.constant 0 : i32
    %c0_i32_1 = arith.constant 0 : i32
    return %c0_i32, %c0_i32_0 : i32, i32
  }
  func.func @transform_6(%arg0: i32) -> (i32, i32) {
    %c0_i32 = arith.constant 0 : i32
    %c0_i32_0 = arith.constant 0 : i32
    %c0_i32_1 = arith.constant 0 : i32
    return %c0_i32, %c0_i32_0 : i32, i32
  }
  func.func @transform_7(%arg0: i32) -> (i32, i32) {
    %c0_i32 = arith.constant 0 : i32
    %c0_i32_0 = arith.constant 0 : i32
    %c0_i32_1 = arith.constant 0 : i32
    return %c0_i32, %c0_i32_0 : i32, i32
  }
  func.func @transform_8(%arg0: i32) -> (i32, i32) {
    %c0_i32 = arith.constant 0 : i32
    %c0_i32_0 = arith.constant 0 : i32
    %c0_i32_1 = arith.constant 0 : i32
    return %c0_i32, %c0_i32_0 : i32, i32
  }
  func.func @transform_9(%arg0: i32) -> (i32, i32) {
    %c0_i32 = arith.constant 0 : i32
    %c0_i32_0 = arith.constant 0 : i32
    %c0_i32_1 = arith.constant 0 : i32
    return %c0_i32, %c0_i32_0 : i32, i32
  }
  func.func @transform_10(%arg0: i32) -> (i32, i32) {
    %c0_i32 = arith.constant 0 : i32
    %c0_i32_0 = arith.constant 0 : i32
    %c0_i32_1 = arith.constant 0 : i32
    return %c0_i32, %c0_i32_0 : i32, i32
  }
  func.func @transform_11(%arg0: i32) -> (i32, i32) {
    %c0_i32 = arith.constant 0 : i32
    %c0_i32_0 = arith.constant 0 : i32
    %c0_i32_1 = arith.constant 0 : i32
    return %c0_i32, %c0_i32_0 : i32, i32
  }
  func.func @transform_12(%arg0: i32) -> (i32, i32) {
    %c0_i32 = arith.constant 0 : i32
    %c0_i32_0 = arith.constant 0 : i32
    %c0_i32_1 = arith.constant 0 : i32
    return %c0_i32, %c0_i32_0 : i32, i32
  }
  func.func @transform_13(%arg0: i32) -> (i32, i32) {
    %c0_i32 = arith.constant 0 : i32
    %c0_i32_0 = arith.constant 0 : i32
    %c0_i32_1 = arith.constant 0 : i32
    return %c0_i32, %c0_i32_0 : i32, i32
  }
  func.func @transform_14(%arg0: i32) -> (i32, i32) {
    %c0_i32 = arith.constant 0 : i32
    %c0_i32_0 = arith.constant 0 : i32
    %c0_i32_1 = arith.constant 0 : i32
    return %c0_i32, %c0_i32_0 : i32, i32
  }
  func.func @transform_15(%arg0: i32) -> (i32, i32) {
    %c0_i32 = arith.constant 0 : i32
    %c0_i32_0 = arith.constant 0 : i32
    %c0_i32_1 = arith.constant 0 : i32
    return %c0_i32, %c0_i32_0 : i32, i32
  }
  func.func @transform_16(%arg0: i32) -> (i32, i32) {
    %c0_i32 = arith.constant 0 : i32
    %c0_i32_0 = arith.constant 0 : i32
    %c0_i32_1 = arith.constant 0 : i32
    return %c0_i32, %c0_i32_0 : i32, i32
  }
  func.func @transform_17(%arg0: i32) -> (i32, i32) {
    %c0_i32 = arith.constant 0 : i32
    %c0_i32_0 = arith.constant 0 : i32
    %c0_i32_1 = arith.constant 0 : i32
    return %c0_i32, %c0_i32_0 : i32, i32
  }
  func.func @transform_18(%arg0: i32) -> (i32, i32) {
    %c0_i32 = arith.constant 0 : i32
    %c0_i32_0 = arith.constant 0 : i32
    %c0_i32_1 = arith.constant 0 : i32
    return %c0_i32, %c0_i32_0 : i32, i32
  }
  func.func @transform_19(%arg0: i32) -> (i32, i32, i32) {
    %c0_i32 = arith.constant 0 : i32
    %c0_i32_0 = arith.constant 0 : i32
    %c0_i32_1 = arith.constant 0 : i32
    return %arg0, %c0_i32, %c0_i32_0 : i32, i32, i32
  }
}

</mosaic_0001>

<bundles_post_ra>
// kernel: net_forward.1
= control target key start
LH: loop header
LB: loop body
LE: loop exit
PB: predicated region body
PF: predicated region fallthrough
CT: control target
= control target key end

     0   :  { %s5469_s0 = inlined_call_operand.vmem [shape: f32[2,32,32], index: 0, kind: input, shape index: {}]   ;;  %s5470_s1 = inlined_call_operand.vmem [shape: f32[160,168], index: 1, kind: input, shape index: {}]   ;;  %s5471_s2 = inlined_call_operand.vmem [shape: f32[1,168], index: 2, kind: input, shape index: {}]   ;;  %s5472_s3 = inlined_call_operand.vmem [shape: f32[14,28], index: 3, kind: input, shape index: {}]   ;;  %s5473_s4 = inlined_call_operand.vmem [shape: f32[14,28], index: 4, kind: input, shape index: {}]   ;;  %s5474_s5 = inlined_call_operand.vmem [shape: f32[168,128], index: 5, kind: input, shape index: {}]   ;;  %s5475_s6 = inlined_call_operand.vmem [shape: f32[168,128], index: 6, kind: input, shape index: {}]   ;;  %s5476_s7 = inlined_call_operand.vmem [shape: f32[640,160], index: 7, kind: input, shape index: {}]   ;;  %s5477_s8 = inlined_call_operand.vmem [shape: f32[1,160], index: 8, kind: input, shape index: {}]   ;;  %s5478_s9 = inlined_call_operand.vmem [shape: f32[5,10], index: 9, kind: input, shape index: {}]   ;;  %s5479_s10 = inlined_call_operand.vmem [shape: f32[5,10], index: 10, kind: input, shape index: {}]   ;;  %s5480_s11 = inlined_call_operand.vmem [shape: f32[160,128], index: 11, kind: input, shape index: {}]   ;;  %s5481_s12 = inlined_call_operand.vmem [shape: f32[160,128], index: 12, kind: input, shape index: {}]   ;;  %s5482_s13 = inlined_call_operand.vmem [shape: f32[640,128], index: 13, kind: input, shape index: {}]   ;;  %s5483_s14 = inlined_call_operand.vmem [shape: f32[1,128], index: 14, kind: input, shape index: {}]   ;;  %s5484_s15 = inlined_call_operand.vmem [shape: f32[128,128], index: 15, kind: input, shape index: {}]   ;;  %s5485_s16 = inlined_call_operand.vmem [shape: f32[1,128], index: 16, kind: input, shape index: {}]   ;;  %s5486_s17 = inlined_call_operand.vmem [shape: f32[128,128], index: 17, kind: input, shape index: {}]   ;;  %s5487_s18 = inlined_call_operand.vmem [shape: f32[1,128], index: 18, kind: input, shape index: {}]   ;;  %s5488_s19 = inlined_call_operand.hbm [shape: f32[2,1,128], index: 19, kind: output, shape index: {}]  }
   0x1   :  { %5499 = sst [smem:[#allocation13_spill]] %s5469_s0 }
   0x2   :  { %5500 = sst [smem:[#allocation14_spill]] %s5470_s1 }
   0x3   :  { %5501 = sst [smem:[#allocation15_spill]] %s5471_s2 }
   0x4   :  { %5502 = sst [smem:[#allocation16_spill]] %s5472_s3 }
   0x5   :  { %5503 = sst [smem:[#allocation17_spill]] %s5473_s4 }
   0x6   :  { %5504 = sst [smem:[#allocation18_spill]] %s5488_s19 }
   0x7   :  { %24 = vsyncpa [#allocation5], 0 }
   0x8   :  { %26 = vsyncpa [#allocation5 + $0x1], 0  ;;  %s3849_s0 = smov 0   ;;  %s3851_s30 = smov 0  }
   0x9   :  { %s3853_s20 = smov 0   ;;  %s3855_s21 = smov 0  }
   0xa LB: > { %5505 = sst [smem:[#allocation7_spill]] %s3732_s0  ;;  %s3870_s1 = sadd.s32 4294967295, %s3744_s21   ;;  %s3744_s21 = sphi %s3855_s21, %s5523_s21   ;;  %s3740_s20 = sphi %s3853_s20, %s5525_s20   ;;  %s3736_s30 = sphi %s3851_s30, %s5527_s30   ;;  %s3732_s0 = sphi %s3849_s0, %s5526_s0  }
   0xb   : > { %5506 = sst [smem:[#allocation8_spill]] %s3740_s20  ;;  %s3221_s22 = sadd.s32 4294967294, %s3744_s21  }
   0xc   : > { %5507 = sst [smem:[#allocation9_spill]] %s3744_s21  ;;  %s3874_s2 = sadd.s32 1, %s3744_s21  }
   0xd   : > { %5508 = sst [smem:[#allocation10_spill]] %s3874_s2  ;;  %s443_s23 = sadd.s32 1, %s3740_s20 }
   0xe   : > { %s440_s24 = ssub.s32 %s3744_s21, %s3874_s2  ;;  %p453_p0 = scmp.ne.s32.totalorder %s3740_s20, %s3736_s30 }
   0xf   : > { %p441_p1 = scmp.eq.s32.totalorder %s440_s24, 0  ;;  %p454_p2 = scmp.eq.s32.totalorder %s3870_s1, 1 }
  0x10   : > { %p459_p3 = scmp.ne.s32.totalorder %s3736_s30, %s3732_s0  ;;  %p460_p4 = scmp.eq.s32.totalorder %s3221_s22, 1 }
  0x11   : > { %s3885_s25 = scalar_select %p441_p1, %s3740_s20, %s443_s23  }
  0x12   : > { %p3887_p5 = por %p454_p2, %p453_p0  ;;  %p3891_p6 = por %p460_p4, %p459_p3 }
  0x13   : > { %5509 = sst [smem:[#allocation11_spill]] %s3885_s25  ;;  %p3224_p7 = scmp.ge.s32.totalorder %s3744_s21, 1 }
  0x14   : > { %s5511_s26 = scalar_select %p3891_p6, 1, 0 }
  0x15   : > { %p540_p8 = scmp.lt.s32.totalorder %s3744_s21, 3 }
  0x16   : > { %5512 = sst [smem:[#allocation12_spill]] %s5511_s26 }
  0x17   : > { %p541_p9 = pnand %p3224_p7, %p540_p8 }
  0x18   : > { %s5513_s29 = sld [smem:[#allocation14_spill]] (!%p541_p9)  ;;  %p595_p10 = scmp.lt.s32.totalorder (!%p541_p9), %s3870_s1, 1 }
  0x19   : > { %544 = sbr.rel (%p541_p9) target bundleno = 2059 (0x80b), region = 96  ;;  %s5514_s28 = sld [smem:[#allocation13_spill]] (!%p541_p9) }
  0x1a   : > { %s5516_s2 = sld [smem:[#allocation16_spill]] (!%p541_p9)  ;;  %s593_s23 = sand.u32 (!%p541_p9), 1, %s3736_s30  }
  0x1b   : > { %s5517_s4 = sld [smem:[#allocation17_spill]] (!%p541_p9)  ;;  %s3267_s21 = sshll.u32 (!%p541_p9), %s3870_s1, 4 }
  0x1c   : > { %s594_s26 = scalar_lea.vmem (!%p541_p9), [#allocation4], %s593_s23  ;;  %s5518_s0 = sld [smem:[#allocation18_spill]] (!%p541_p9) }
  0x1e   : > { %v623_v0 = vld [vmem:[%s5513_s29 + $0x78] sm:$0xff]  ;;  %v622_v1 = vld [vmem:[%s5513_s29 + $0x70] sm:$0xff]  ;;  %v621_v2 = vld [vmem:[%s5513_s29 + $0x68] sm:$0xff]  ;;  %v3746_v4 = vmov 0.0   ;;  %s596_s25 = scalar_select %p595_p10, %s3870_s1, 1  ;;  %vm624_vm0 = vcmask 261120  }
  0x1f   : > { %661 = vmatprep.subr.mxu0 %v623_v0  ;;  %v620_v3 = vld [vmem:[%s5513_s29 + $0x60] sm:$0xff]  ;;  %701 = vmatprep.mubr.f32.mxu0 %v3746_v4  ;;  %v619_v5 = vld [vmem:[%s5513_s29 + $0x58] sm:$0xff]  ;;  %v618_v6 = vld [vmem:[%s5513_s29 + $0x50] sm:$0xff]  ;;  %vm1227_vm1 = vcmask 1043456   ;;  %vm1220_vm2 = vcmask 228352   ;;  %vm1421_vm3 = vcmask 326656  }
  0x20   : > { %662 = vmatpush1.msra.mxu0 %v622_v1  ;;  %v611_v7 = vld [vmem:[%s5513_s29 + $0x38] sm:$0xff]  ;;  %814 = vmatprep.mubr.f32.mxu1 %v3746_v4  ;;  %v610_v8 = vld [vmem:[%s5513_s29 + $0x30] sm:$0xff]  ;;  %v609_v9 = vld [vmem:[%s5513_s29 + $0x28] sm:$0xff]  ;;  %s3270_s24 = sshll.u32 %s596_s25, 5  ;;  %vm2195_vm4 = vcmask 1041408   ;;  %vm2191_vm5 = vcmask 80896  }
  0x21   : > { %663 = vmatprep.subr.mxu0 %v621_v2  ;;  %3635 = vmatprep.subr.mxu1 %v611_v7  ;;  %v608_v10 = vld [vmem:[%s5513_s29 + $0x20] sm:$0xff]  ;;  %v617_v11 = vld [vmem:[%s5513_s29 + $0x48] sm:$0xff]  ;;  %v607_v12 = vld [vmem:[%s5513_s29 + $0x18] sm:$0xff]  ;;  %s3943_s22 = scalar_lea.vmem %s5514_s28, %s3270_s24  ;;  %vm3747_vm6 = vmmov 0   ;;  %s3748_s25 = smov [#allocation4]  }
  0x22   : > { %664 = vmatpush1.msra.mxu0 %v620_v3  ;;  %3639 = vmatpush1.msra.mxu1 %v610_v8  ;;  %v616_v13 = vld [vmem:[%s5513_s29 + $0x40] sm:$0xff]  ;;  %v606_v14 = vld [vmem:[%s5513_s29 + $0x10] sm:$0xff]  ;;  %v605_v16 = vld [vmem:[%s5513_s29 + $0x8] sm:$0xff]  ;;  %s5519_s27 = smov %s5518_s0  ;;  %s5434_s28 = scalar_lea.hbm %s5518_s0, %s3267_s21 }
  0x23   : > { %665 = vmatprep.subr.mxu0 %v619_v5  ;;  %3636 = vmatprep.subr.mxu1 %v609_v9  ;;  %v612_v15 = vld [vmem:[%s3943_s22 + $0x1] sm:$0xff]  ;;  %v602_v18 = vld [vmem:[%s3943_s22 + $0x10] sm:$0xff]  ;;  %v603_v20 = vld [vmem:[%s3943_s22 + $0x18] sm:$0xf]  ;;  %s3688_s1 = sshll.u32 %s3748_s25, 4  ;;  %s3689_s1 = int_to_ptr.vmem [resolvable:$false] %s3688_s1 }
  0x24   : > { %666 = vmatpush1.msra.mxu0 %v618_v6  ;;  %3640 = vmatpush1.msra.mxu1 %v608_v10  ;;  %v604_v17 = vld [vmem:[%s5513_s29] sm:$0xff]  ;;  %v613_v19 = vld [vmem:[%s3943_s22 + $0x9] sm:$0xff]  ;;  %v959_v21 = vld [vmem:[%s5513_s29 + $0xf8] sm:$0xff]  ;;  %s3690_s19 = scalar_lea.vmem %s3689_s1, 32 }
  0x25   : > { %667 = vmatprep.subr.mxu0 %v617_v11  ;;  %3637 = vmatprep.subr.mxu1 %v607_v12  ;;  %v614_v22 = vld [vmem:[%s3943_s22 + $0x11] sm:$0xff]  ;;  %v957_v25 = vld [vmem:[%s5513_s29 + $0xe8] sm:$0xff]  ;;  %v615_v26 = vld [vmem:[%s3943_s22 + $0x19] sm:$0xf] }
  0x26   : > { %668 = vmatpush1.msra.mxu0 %v616_v13  ;;  %3641 = vmatpush1.msra.mxu1 %v606_v14  ;;  %v838_v23 = vld [vmem:[%s5513_s29 + $0xb8] sm:$0xff]  ;;  %v958_v24 = vld [vmem:[%s5513_s29 + $0xf0] sm:$0xff]  ;;  %v956_v27 = vld [vmem:[%s5513_s29 + $0xe0] sm:$0xff] }
  0x27   : > { %3227 = vmatmul.mubr.msk.f32.vlgmr.msra.gmra.mxu0 %vm624_vm0, %v612_v15  ;;  %3638 = vmatprep.subr.mxu1 %v605_v16  ;;  %v955_v28 = vld [vmem:[%s5513_s29 + $0xd8] sm:$0xff]  ;;  %v954_v29 = vld [vmem:[%s5513_s29 + $0xd0] sm:$0xff]  ;;  %v953_v30 = vld [vmem:[%s5513_s29 + $0xc8] sm:$0xff] }
  0x28   : > { %707 = vmatprep.mubr.f32.mxu0 %v3746_v4  ;;  %3642 = vmatpush1.msra.mxu1 %v604_v17  ;;  %v600_v31 = vld [vmem:[%s3943_s22] sm:$0xff]  ;;  %v837_v33 = vld [vmem:[%s5513_s29 + $0xb0] sm:$0xff]  ;;  %v836_v34 = vld [vmem:[%s5513_s29 + $0xa8] sm:$0xff] }
  0x29   : > { %762 = vmatprep.subr.mxu0 %v611_v7  ;;  %3233 = vmatmul.mubr.msk.f32.vlgmr.msra.gmra.mxu1 %vm624_vm0, %v602_v18  ;;  %v952_v32 = vld [vmem:[%s5513_s29 + $0xc0] sm:$0xff]  ;;  %v601_v37 = vld [vmem:[%s3943_s22 + $0x8] sm:$0xff]  ;;  %v834_v38 = vld [vmem:[%s5513_s29 + $0x98] sm:$0xff] }
  0x2a   : > { %763 = vmatpush1.msra.mxu0 %v610_v8  ;;  %820 = vmatprep.mubr.f32.mxu1 %v3746_v4  ;;  %v948_v35 = vld [vmem:[%s3943_s22 + $0x3] sm:$0xff]  ;;  %v833_v39 = vld [vmem:[%s5513_s29 + $0x90] sm:$0xff]  ;;  %v1080_v44 = vld [vmem:[%s5513_s29 + $0x138] sm:$0xff] }
  0x2b   : > { %3228 = vmatmul.mubr.msk.f32.gmra.mxu0 %vm624_vm0, %v613_v19  ;;  %764 = vmatprep.subr.mxu0 %v609_v9  ;;  %v835_v36 = vld [vmem:[%s5513_s29 + $0xa0] sm:$0xff]  ;;  %v832_v40 = vld [vmem:[%s5513_s29 + $0x88] sm:$0xff]  ;;  %v1079_v45 = vld [vmem:[%s5513_s29 + $0x130] sm:$0xff] }
  0x2c   : > { %713 = vmatprep.mubr.f32.mxu0 %v3746_v4  ;;  %765 = vmatpush1.msra.mxu0 %v608_v10  ;;  %v949_v41 = vld [vmem:[%s3943_s22 + $0xb] sm:$0xff]  ;;  %v831_v42 = vld [vmem:[%s5513_s29 + $0x80] sm:$0xff]  ;;  %v950_v46 = vld [vmem:[%s3943_s22 + $0x13] sm:$0xff] }
  0x2d   : > { %766 = vmatprep.subr.mxu0 %v607_v12  ;;  %3234 = vmatmul.mubr.msk.f32.gmra.mxu1 %vm624_vm0, %v603_v20  ;;  %v827_v43 = vld [vmem:[%s3943_s22 + $0x2] sm:$0xff]  ;;  %v828_v49 = vld [vmem:[%s3943_s22 + $0xa] sm:$0xff]  ;;  %v1076_v50 = vld [vmem:[%s5513_s29 + $0x118] sm:$0xff] }
  0x2e   : > { %767 = vmatpush1.msra.mxu0 %v606_v14  ;;  %996 = vmatprep.subr.mxu1 %v959_v21  ;;  %v1078_v47 = vld [vmem:[%s5513_s29 + $0x128] sm:$0xff]  ;;  %v1077_v48 = vld [vmem:[%s5513_s29 + $0x120] sm:$0xff]  ;;  %v1075_v51 = vld [vmem:[%s5513_s29 + $0x110] sm:$0xff] }
  0x2f   : > { %3229 = vmatmul.mubr.msk.f32.gmra.mxu0 %vm624_vm0, %v614_v22  ;;  %768 = vmatprep.subr.mxu0 %v605_v16  ;;  %v951_v52 = vld [vmem:[%s3943_s22 + $0x1b] sm:$0xf]  ;;  %v1074_v53 = vld [vmem:[%s5513_s29 + $0x108] sm:$0xff]  ;;  %v1073_v54 = vld [vmem:[%s5513_s29 + $0x100] sm:$0xff] }
  0x30   : > { %719 = vmatprep.mubr.f32.mxu0 %v3746_v4  ;;  %769 = vmatpush1.msra.mxu0 %v604_v17  ;;  %v829_v55 = vld [vmem:[%s3943_s22 + $0x12] sm:$0xff]  ;;  %v830_v56 = vld [vmem:[%s3943_s22 + $0x1a] sm:$0xf]  ;;  %v1069_v57 = vld [vmem:[%s3943_s22 + $0x4] sm:$0xff] }
  0x31   : > { %875 = vmatprep.subr.mxu0 %v838_v23  ;;  %997 = vmatpush1.msra.mxu1 %v958_v24  ;;  %v1070_v58 = vld [vmem:[%s3943_s22 + $0xc] sm:$0xff]  ;;  %v1071_v59 = vld [vmem:[%s3943_s22 + $0x14] sm:$0xff]  ;;  %v1072_v60 = vld [vmem:[%s3943_s22 + $0x1c] sm:$0xf]  ;;  %s5515_s22 = sld [smem:[#allocation15_spill]] }
  0x32   : > { %998 = vmatprep.subr.mxu1 %v957_v25  ;;  %1036 = vmatprep.mubr.f32.mxu1 %v3746_v4  ;;  %v1415_v61 = vld [vmem:[%s5474_s5 + $0x78] sm:$0xff]  ;;  %v1414_v62 = vld [vmem:[%s5474_s5 + $0x70] sm:$0xff]  ;;  %v1413_v63 = vld [vmem:[%s5474_s5 + $0x68] sm:$0xff] }
  0x33   : > { %3230 = vmatmul.mubr.msk.f32.gmra.mxu0 %vm624_vm0, %v615_v26  ;;  %999 = vmatpush1.msra.mxu1 %v956_v27  ;;  %v1412_v0 = vld [vmem:[%s5474_s5 + $0x60] sm:$0xff]  ;;  %v1411_v1 = vld [vmem:[%s5474_s5 + $0x58] sm:$0xff]  ;;  %v1410_v2 = vld [vmem:[%s5474_s5 + $0x50] sm:$0xff] }
  0x34   : > { %802 = vmatprep.mubr.f32.mxu0 %v3746_v4  ;;  %1000 = vmatprep.subr.mxu1 %v955_v28  ;;  %v1409_v3 = vld [vmem:[%s5474_s5 + $0x48] sm:$0xff]  ;;  %v1408_v5 = vld [vmem:[%s5474_s5 + $0x40] sm:$0xff]  ;;  %v1407_v6 = vld [vmem:[%s5474_s5 + $0x38] sm:$0xff] }
  0x35   : > { %1001 = vmatpush1.msra.mxu1 %v954_v29  ;;  %v1406_v7 = vld [vmem:[%s5474_s5 + $0x30] sm:$0xff]  ;;  %v1405_v8 = vld [vmem:[%s5474_s5 + $0x28] sm:$0xff]  ;;  %v1404_v9 = vld [vmem:[%s5474_s5 + $0x20] sm:$0xff] }
  0x36   : > { %1002 = vmatprep.subr.mxu1 %v953_v30  ;;  %v1403_v10 = vld [vmem:[%s5474_s5 + $0x18] sm:$0xff]  ;;  %v1402_v11 = vld [vmem:[%s5474_s5 + $0x10] sm:$0xff] }
  0x37   : > { %3231 = vmatmul.mubr.msk.f32.vlgmr.msra.gmra.mxu0 %vm624_vm0, %v600_v31  ;;  %1003 = vmatpush1.msra.mxu1 %v952_v32 }
  0x38   : > { %876 = vmatpush1.msra.mxu0 %v837_v33  ;;  %808 = vmatprep.mubr.f32.mxu0 %v3746_v4 }
  0x39   : > { %877 = vmatprep.subr.mxu0 %v836_v34  ;;  %3239 = vmatmul.mubr.msk.f32.vlgmr.msra.gmra.mxu1 %vm624_vm0, %v948_v35 }
  0x3a   : > { %878 = vmatpush1.msra.mxu0 %v835_v36  ;;  %1042 = vmatprep.mubr.f32.mxu1 %v3746_v4 }
  0x3b   : > { %3232 = vmatmul.mubr.msk.f32.gmra.mxu0 %vm624_vm0, %v601_v37  ;;  %879 = vmatprep.subr.mxu0 %v834_v38 }
  0x3c   : > { %880 = vmatpush1.msra.mxu0 %v833_v39  ;;  %915 = vmatprep.mubr.f32.mxu0 %v3746_v4 }
  0x3d   : > { %881 = vmatprep.subr.mxu0 %v832_v40  ;;  %3240 = vmatmul.mubr.msk.f32.gmra.mxu1 %vm624_vm0, %v949_v41 }
  0x3e   : > { %882 = vmatpush1.msra.mxu0 %v831_v42  ;;  %1048 = vmatprep.mubr.f32.mxu1 %v3746_v4 }
  0x3f   : > { %3235 = vmatmul.mubr.msk.f32.vlgmr.msra.gmra.mxu0 %vm624_vm0, %v827_v43  ;;  %1117 = vmatprep.subr.mxu0 %v1080_v44  ;;  %v1192_v43 = vlaneseq }
  0x40   : > { %921 = vmatprep.mubr.f32.mxu0 %v3746_v4  ;;  %1118 = vmatpush1.msra.mxu0 %v1079_v45 }
  0x41   : > { %3241 = vmatmul.mubr.msk.f32.gmra.mxu1 %vm624_vm0, %v950_v46  ;;  %1119 = vmatprep.subr.mxu0 %v1078_v47 }
  0x42   : > { %1120 = vmatpush1.msra.mxu0 %v1077_v48  ;;  %1054 = vmatprep.mubr.f32.mxu1 %v3746_v4 }
  0x43   : > { %3236 = vmatmul.mubr.msk.f32.gmra.mxu0 %vm624_vm0, %v828_v49  ;;  %1121 = vmatprep.subr.mxu0 %v1076_v50  ;;  %v4142_v50 = vshrl.u32 %v1192_v43, 7 }
  0x44   : > { %927 = vmatprep.mubr.f32.mxu0 %v3746_v4  ;;  %1122 = vmatpush1.msra.mxu0 %v1075_v51 }
  0x45   : > { %3242 = vmatmul.mubr.msk.f32.gmra.mxu1 %vm624_vm0, %v951_v52  ;;  %1123 = vmatprep.subr.mxu0 %v1074_v53 }
  0x46   : > { %1124 = vmatpush1.msra.mxu0 %v1073_v54  ;;  %1298 = vmatprep.mubr.f32.mxu1 %v3746_v4 }
  0x47   : > { %3237 = vmatmul.mubr.msk.f32.gmra.mxu0 %vm624_vm0, %v829_v55  ;;  %1428 = vmatprep.subr.mxu0 %v3746_v4 }
  0x48   : > { %933 = vmatprep.mubr.f32.mxu0 %v3746_v4 }
  0x4b   : > { %3238 = vmatmul.mubr.msk.f32.gmra.mxu0 %vm624_vm0, %v830_v56 }
  0x4c   : > { %1157 = vmatprep.mubr.f32.mxu0 %v3746_v4 }
  0x4f   : > { %3243 = vmatmul.mubr.msk.f32.vlgmr.msra.gmra.mxu0 %vm624_vm0, %v1069_v57 }
  0x50   : > { %1163 = vmatprep.mubr.f32.mxu0 %v3746_v4  ;;  %1429 = vmatpush1.msra.mxu0 %v1415_v61 }
  0x51   : > { %1430 = vmatprep.subr.mxu0 %v3746_v4 }
  0x52   : > { %1431 = vmatpush1.msra.mxu0 %v1414_v62 }
  0x53   : > { %3244 = vmatmul.mubr.msk.f32.gmra.mxu0 %vm624_vm0, %v1070_v58  ;;  %1432 = vmatprep.subr.mxu0 %v3746_v4 }
  0x54   : > { %1169 = vmatprep.mubr.f32.mxu0 %v3746_v4  ;;  %1433 = vmatpush1.msra.mxu0 %v1413_v63 }
  0x55   : > { %1434 = vmatprep.subr.mxu0 %v3746_v4 }
  0x56   : > { %1435 = vmatpush1.msra.mxu0 %v1412_v0 }
  0x57   : > { %3245 = vmatmul.mubr.msk.f32.gmra.mxu0 %vm624_vm0, %v1071_v59  ;;  %1436 = vmatprep.subr.mxu0 %v3746_v4 }
  0x58   : > { %1175 = vmatprep.mubr.f32.mxu0 %v3746_v4  ;;  %1437 = vmatpush1.msra.mxu0 %v1411_v1  ;;  %v1194_v1 = vsub.s32 0, %v4142_v50 }
  0x59   : > { %1438 = vmatprep.subr.mxu0 %v3746_v4 }
  0x5a   : > { %1439 = vmatpush1.msra.mxu0 %v1410_v2 }
  0x5b   : > { %3246 = vmatmul.mubr.msk.f32.gmra.mxu0 %vm624_vm0, %v1072_v60  ;;  %1440 = vmatprep.subr.mxu0 %v3746_v4 }
  0x5c   : > { %1441 = vmatpush1.msra.mxu0 %v1409_v3 }
  0x5d   : > { %1442 = vmatprep.subr.mxu0 %v3746_v4 }
  0x5e   : > { %1443 = vmatpush1.msra.mxu0 %v1408_v5 }
  0x5f   : > { %1444 = vmatprep.subr.mxu0 %v3746_v4 }
  0x60   : > { %1445 = vmatpush1.msra.mxu0 %v1407_v6 }
  0x61   : > { %1446 = vmatprep.subr.mxu0 %v3746_v4 }
  0x62   : > { %1447 = vmatpush1.msra.mxu0 %v1406_v7  ;;  %v1190_v7 = vld [vmem:[%s5515_s22] sm:$0x3]  ;;  %s3166_s22 = sshll.u32 %s594_s26, 4  ;;  %s3167_s22 = int_to_ptr.vmem [resolvable:$true] %s3166_s22 }
  0x63   : > { %1448 = vmatprep.subr.mxu0 %v3746_v4  ;;  %p3691_p0 = scmp.lt.s32.totalorder %s3167_s22, %s3689_s1 }
  0x64   : > { %1449 = vmatpush1.msra.mxu0 %v1405_v8  ;;  %v1198_v8 = vsub.s32 1, %v4142_v50  ;;  %v2273_v50 = vld [vmem:[%s5479_s10] sm:$0x1f] }
  0x65   : > { %1450 = vmatprep.subr.mxu0 %v3746_v4 }
  0x66   : > { %1451 = vmatpush1.msra.mxu0 %v1404_v9 }
  0x67   : > { %1452 = vmatprep.subr.mxu0 %v3746_v4 }
  0x68   : > { %1453 = vmatpush1.msra.mxu0 %v1403_v10 }
  0x69   : > { %1454 = vmatprep.subr.mxu0 %v3746_v4 }
  0x6a   : > { %1455 = vmatpush1.msra.mxu0 %v1402_v11 }
  0x6b   : > { %1456 = vmatprep.subr.mxu0 %v3746_v4 }
  0xe7   : > { %v703_v12 = vpop.f32.mrf.mxu0 }
  0xe9   : > { %v705_v13 = vpop.f32.mrf.mxu0  ;;  %v816_v17 = vpop.f32.mrf.mxu1 }
  0xeb   : > { %v709_v14 = vpop.f32.mrf.mxu0  ;;  %v818_v19 = vpop.f32.mrf.mxu1 }
  0xed   : > { %v711_v15 = vpop.f32.mrf.mxu0  ;;  %v822_v22 = vpop.f32.mrf.mxu1 }
  0xef   : > { %v715_v16 = vpop.f32.mrf.mxu0  ;;  %v824_v25 = vpop.f32.mrf.mxu1 }
  0xf0   : > { %v817_v48 = vadd.f32 %v816_v17, %v715_v16  ;;  %v1195_v17 = vrot.slane %v1190_v7, %v1194_v1 }
  0xf1   : > { %v717_v18 = vpop.f32.mrf.mxu0 }
  0xf2   : > { %v819_v46 = vadd.f32 %v818_v19, %v717_v18 }
  0xf3   : > { %v721_v20 = vpop.f32.mrf.mxu0 }
  0xf4   : > { %v823_v47 = vadd.f32 %v822_v22, %v721_v20 }
  0xf5   : > { %v723_v21 = vpop.f32.mrf.mxu0 }
  0xf6   : > { %v825_v52 = vadd.f32 %v824_v25, %v723_v21  ;;  %v1199_v21 = vrot.slane %v1190_v7, %v1198_v8  ;;  %v1419_v7 = vld [vmem:[%s5474_s5 + $0x98] sm:$0xff] }
  0xf7   : > { %v804_v23 = vpop.f32.mrf.mxu0 }
  0xf8   : > { %v805_v62 = vadd.f32 %v804_v23, %v703_v12 }
  0xf9   : > { %v806_v24 = vpop.f32.mrf.mxu0  ;;  %v1038_v28 = vpop.f32.mrf.mxu1 }
  0xfa   : > { %v807_v59 = vadd.f32 %v806_v24, %v705_v13 }
  0xfb   : > { %v810_v26 = vpop.f32.mrf.mxu0  ;;  %v1040_v31 = vpop.f32.mrf.mxu1 }
  0xfc   : > { %v811_v56 = vadd.f32 %v810_v26, %v709_v14 }
  0xfd   : > { %v812_v27 = vpop.f32.mrf.mxu0  ;;  %v1044_v34 = vpop.f32.mrf.mxu1 }
  0xfe   : > { %v813_v53 = vadd.f32 %v812_v27, %v711_v15 }
  0xff   : > { %v917_v29 = vpop.f32.mrf.mxu0  ;;  %v1046_v36 = vpop.f32.mrf.mxu1 }
 0x100   : > { %v940_v9 = vadd.f32 %v917_v29, %v805_v62  ;;  %v1505_v62 = vld [vmem:[%s5475_s6 + $0x10] sm:$0xff] }
 0x101   : > { %v919_v30 = vpop.f32.mrf.mxu0  ;;  %v1050_v39 = vpop.f32.mrf.mxu1 }
 0x102   : > { %v941_v3 = vadd.f32 %v919_v30, %v807_v59  ;;  %v1061_v24 = vadd.f32 %v1038_v28, %v940_v9  ;;  %v1508_v59 = vld [vmem:[%s5475_s6 + $0x28] sm:$0xff]  ;;  %v1522_v9 = vld [vmem:[%s5475_s6 + $0x98] sm:$0xff] }
 0x103   : > { %v923_v32 = vpop.f32.mrf.mxu0  ;;  %v1052_v42 = vpop.f32.mrf.mxu1 }
 0x104   : > { %v942_v63 = vadd.f32 %v923_v32, %v811_v56  ;;  %v1062_v20 = vadd.f32 %v1040_v31, %v941_v3  ;;  %v1511_v56 = vld [vmem:[%s5475_s6 + $0x40] sm:$0xff] }
 0x105   : > { %v925_v33 = vpop.f32.mrf.mxu0  ;;  %v1056_v49 = vpop.f32.mrf.mxu1  ;;  %v1503_v3 = vld [vmem:[%s5475_s6] sm:$0xff] }
 0x106   : > { %v943_v60 = vadd.f32 %v925_v33, %v813_v53  ;;  %v1063_v16 = vadd.f32 %v1044_v34, %v942_v63  ;;  %v1514_v53 = vld [vmem:[%s5475_s6 + $0x58] sm:$0xff]  ;;  %v1401_v63 = vld [vmem:[%s5474_s5 + $0x8] sm:$0xff] }
 0x107   : > { %v929_v35 = vpop.f32.mrf.mxu0  ;;  %v1058_v0 = vpop.f32.mrf.mxu1  ;;  %1457 = vmatpush1.msra.mxu0 %v1401_v63  ;;  %v1619_v63 = vld [vmem:[%s5476_s7 + $0x70] sm:$0xff] }
 0x108   : > { %v944_v57 = vadd.f32 %v929_v35, %v817_v48  ;;  %v1064_v13 = vadd.f32 %v1046_v36, %v943_v60  ;;  %v1517_v48 = vld [vmem:[%s5475_s6 + $0x70] sm:$0xff]  ;;  %v1507_v60 = vld [vmem:[%s5475_s6 + $0x20] sm:$0xff]  ;;  %1458 = vmatprep.subr.mxu0 %v3746_v4 }
 0x109   : > { %v931_v37 = vpop.f32.mrf.mxu0 }
 0x10a   : > { %v945_v54 = vadd.f32 %v931_v37, %v819_v46  ;;  %v1065_v10 = vadd.f32 %v1050_v39, %v944_v57  ;;  %v1311_v46 = vld [vmem:[%s5517_s4] sm:$0xff]  ;;  %v1510_v57 = vld [vmem:[%s5475_s6 + $0x38] sm:$0xff] }
 0x10b   : > { %v935_v38 = vpop.f32.mrf.mxu0 }
 0x10c   : > { %v946_v55 = vadd.f32 %v935_v38, %v823_v47  ;;  %v1066_v5 = vadd.f32 %v1052_v42, %v945_v54  ;;  %v1518_v47 = vld [vmem:[%s5475_s6 + $0x78] sm:$0xff]  ;;  %v1513_v54 = vld [vmem:[%s5475_s6 + $0x50] sm:$0xff] }
 0x10d   : > { %v937_v40 = vpop.f32.mrf.mxu0 }
 0x10e   : > { %v947_v61 = vadd.f32 %v937_v40, %v825_v52  ;;  %v1067_v6 = vadd.f32 %v1056_v49, %v946_v55  ;;  %v1312_v49 = vld [vmem:[%s5517_s4 + $0x8] sm:$0x3f]  ;;  %v1515_v52 = vld [vmem:[%s5475_s6 + $0x60] sm:$0xff]  ;;  %s3684_s4 = scalar_lea.vmem %s3167_s22, 16 }
 0x10f   : > { %v1159_v41 = vpop.f32.mrf.mxu0  ;;  %v1512_v55 = vld [vmem:[%s5475_s6 + $0x48] sm:$0xff]  ;;  %p3685_p11 = scmp.ne.s32.totalorder %s3167_s22, %s3684_s4  ;;  %p3692_p1 = scmp.lt.s32.totalorder %s3690_s19, %s3684_s4 }
 0x110   : > { %v1068_v14 = vadd.f32 %v1058_v0, %v947_v61  ;;  %v1182_v32 = vadd.f32 %v1159_v41, %v1061_v24  ;;  %v1506_v61 = vld [vmem:[%s5475_s6 + $0x18] sm:$0xff]  ;;  %v1504_v0 = vld [vmem:[%s5475_s6 + $0x8] sm:$0xff] }
 0x111   : > { %v1161_v44 = vpop.f32.mrf.mxu0  ;;  %p3686_p12 = pnand %p3685_p11, %p3887_p5  ;;  %p3693_p2 = por %p3692_p1, %p3691_p0 }
 0x112   : > { %v1183_v27 = vadd.f32 %v1161_v44, %v1062_v20  ;;  %v1202_v39 = vadd.f32 %v1195_v17, %v1182_v32  ;;  %v1218_v44 = vld [vmem:[%s5516_s2] sm:$0xff]  ;;  %v1668_v32 = vld [vmem:[%s5476_s7 + $0x1e8] sm:$0xff] }
 0x113   : > { %v1165_v45 = vpop.f32.mrf.mxu0  ;;  %p3687_p13 = pneg %p3686_p12 }
 0x114   : > { %v1184_v25 = vadd.f32 %v1165_v45, %v1063_v16  ;;  %v1203_v38 = vadd.f32 %v1199_v21, %v1183_v27  ;;  %v1210_v41 = vmax.f32 %v1202_v39, 0.0  ;;  %v1219_v45 = vld [vmem:[%s5516_s2 + $0x8] sm:$0x3f]  ;;  %v1636_v16 = vld [vmem:[%s5476_s7 + $0xf8] sm:$0xff]  ;;  %v1635_v27 = vld [vmem:[%s5476_s7 + $0xf0] sm:$0xff]  ;;  %s3154_s2 = scalar_lea.sflag [#allocation5], %s593_s23 }
 0x115   : > { %v1167_v51 = vpop.f32.mrf.mxu0  ;;  %v1631_v39 = vld [vmem:[%s5476_s7 + $0xd0] sm:$0xff]  ;;  %p3694_p3 = pnand %p3693_p2, %p3687_p13 }
 0x116   : > { %v1185_v22 = vadd.f32 %v1167_v51, %v1064_v13  ;;  %v1204_v36 = vadd.f32 %v1195_v17, %v1184_v25  ;;  %v1211_v43 = vmax.f32 %v1203_v38, 0.0  ;;  %v1516_v51 = vld [vmem:[%s5475_s6 + $0x68] sm:$0xff]  ;;  %v1632_v38 = vld [vmem:[%s5476_s7 + $0xd8] sm:$0xff] }
 0x117   : > { %v1171_v58 = vpop.f32.mrf.mxu0  ;;  %v1417_v13 = vld [vmem:[%s5474_s5 + $0x88] sm:$0xff] }
 0x118   : > { %v1186_v18 = vadd.f32 %v1171_v58, %v1065_v10  ;;  %v1205_v34 = vadd.f32 %v1199_v21, %v1185_v22  ;;  %v1212_v42 = vmax.f32 %v1204_v36, 0.0  ;;  %v1509_v58 = vld [vmem:[%s5475_s6 + $0x30] sm:$0xff]  ;;  %v1633_v36 = vld [vmem:[%s5476_s7 + $0xe0] sm:$0xff] }
 0x119   : > { %v1173_v2 = vpop.f32.mrf.mxu0  ;;  %v1418_v10 = vld [vmem:[%s5474_s5 + $0x90] sm:$0xff] }
 0x11a   : > { %v1187_v12 = vadd.f32 %v1173_v2, %v1066_v5  ;;  %v1206_v33 = vadd.f32 %v1195_v17, %v1186_v18  ;;  %v1213_v28 = vmax.f32 %v1205_v34, 0.0  ;;  %v1400_v2 = vld [vmem:[%s5474_s5] sm:$0xff] }
 0x11b   : > { %v1177_v11 = vpop.f32.mrf.mxu0  ;;  %1459 = vmatpush1.msra.mxu0 %v1400_v2  ;;  %v1420_v5 = vld [vmem:[%s5474_s5 + $0xa0] sm:$0xff]  ;;  %v1618_v2 = vld [vmem:[%s5476_s7 + $0x68] sm:$0xff] }
 0x11c   : > { %v1188_v15 = vadd.f32 %v1177_v11, %v1067_v6  ;;  %v1207_v29 = vadd.f32 %v1199_v21, %v1187_v12  ;;  %v1214_v40 = vmax.f32 %v1206_v33, 0.0  ;;  %1482 = vmatprep.subr.mxu0 %v3746_v4  ;;  %v1523_v6 = vld [vmem:[%s5475_s6 + $0xa0] sm:$0xff]  ;;  %v1521_v11 = vld [vmem:[%s5475_s6 + $0x90] sm:$0xff] }
 0x11d   : > { %v1179_v19 = vpop.f32.mrf.mxu0  ;;  %1483 = vmatpush2.msra.mxu0 %v1420_v5  ;;  %v1416_v12 = vld [vmem:[%s5474_s5 + $0x80] sm:$0xff]  ;;  %v1616_v5 = vld [vmem:[%s5476_s7 + $0x58] sm:$0xff] }
 0x11e   : > { %v1189_v23 = vadd.f32 %v1179_v19, %v1068_v14  ;;  %v1208_v26 = vadd.f32 %v1195_v17, %v1188_v15  ;;  %v1215_v31 = vmax.f32 %v1207_v29, 0.0  ;;  %1484 = vmatprep.subr.mxu0 %v3746_v4  ;;  %v1520_v14 = vld [vmem:[%s5475_s6 + $0x88] sm:$0xff]  ;;  %v1519_v15 = vld [vmem:[%s5475_s6 + $0x80] sm:$0xff]  ;;  %v1670_v17 = vld [vmem:[%s5476_s7 + $0x1f8] sm:$0xff] }
 0x11f   : > { %1485 = vmatpush2.msra.mxu0 %v1419_v7  ;;  %v1669_v29 = vld [vmem:[%s5476_s7 + $0x1f0] sm:$0xff]  ;;  %v1614_v7 = vld [vmem:[%s5476_s7 + $0x48] sm:$0xff] }
 0x120   : > { %v1209_v30 = vadd.f32 %v1199_v21, %v1189_v23  ;;  %v1216_v37 = vmax.f32 %v1208_v26, 0.0  ;;  %1486 = vmatprep.subr.mxu0 %v3746_v4 }
 0x121   : > { %1487 = vmatpush2.msra.mxu0 %v1418_v10  ;;  %v1612_v10 = vld [vmem:[%s5476_s7 + $0x38] sm:$0xff] }
 0x122   : > { %v1217_v35 = vmax.f32 %v1209_v30, 0.0  ;;  %1488 = vmatprep.subr.mxu0 %v3746_v4  ;;  %v1634_v30 = vld [vmem:[%s5476_s7 + $0xe8] sm:$0xff] }
 0x123   : > { %1489 = vmatpush2.msra.mxu0 %v1417_v13  ;;  %v1610_v13 = vld [vmem:[%s5476_s7 + $0x28] sm:$0xff] }
 0x124   : > { %3247 = vmatprep.subr.msk.mxu1 %vm1227_vm1, %v1217_v35  ;;  %1490 = vmatprep.subr.mxu0 %v3746_v4 }
 0x125   : > { %3248 = vmatpush1.msk.msra.mxu1 %vm1227_vm1, %v1216_v37  ;;  %1491 = vmatpush2.msra.mxu0 %v1416_v12  ;;  %v1608_v12 = vld [vmem:[%s5476_s7 + $0x18] sm:$0xff] }
 0x126   : > { %1260 = vmatprep.subr.mxu1 %v1215_v31  ;;  %1671 = vmatprep.subr.mxu0 %v1670_v17  ;;  %v1606_v17 = vld [vmem:[%s5476_s7 + $0x8] sm:$0xff] }
 0x127   : > { %1261 = vmatpush1.msra.mxu1 %v1214_v40 }
 0x128   : > { %1262 = vmatprep.subr.mxu1 %v1213_v28 }
 0x129   : > { %1263 = vmatpush1.msra.mxu1 %v1212_v42 }
 0x12a   : > { %1264 = vmatprep.subr.mxu1 %v1211_v43 }
 0x12b   : > { %1265 = vmatpush1.msra.mxu1 %v1210_v41 }
 0x12c   : > { %3249 = vmatmul.mubr.msk.f32.vlgmr.msra.gmra.mxu1 %vm1220_vm2, %v1218_v44  ;;  %3251 = vmatprep.subr.msk.mxu1 %vm1227_vm1, %v1217_v35  ;;  %v1628_v44 = vld [vmem:[%s5476_s7 + $0xb8] sm:$0xff] }
 0x12d   : > { %3252 = vmatpush1.msk.msra.mxu1 %vm1227_vm1, %v1216_v37  ;;  %1304 = vmatprep.mubr.f32.mxu1 %v3746_v4  ;;  %v1667_v37 = vld [vmem:[%s5476_s7 + $0x1e0] sm:$0xff] }
 0x12e   : > { %1345 = vmatprep.subr.mxu1 %v1215_v31  ;;  %v1666_v31 = vld [vmem:[%s5476_s7 + $0x1d8] sm:$0xff] }
 0x12f   : > { %1346 = vmatpush1.msra.mxu1 %v1214_v40  ;;  %v1665_v40 = vld [vmem:[%s5476_s7 + $0x1d0] sm:$0xff] }
 0x130   : > { %3250 = vmatmul.mubr.msk.f32.gmra.mxu1 %vm1220_vm2, %v1219_v45  ;;  %1347 = vmatprep.subr.mxu1 %v1213_v28  ;;  %v1630_v28 = vld [vmem:[%s5476_s7 + $0xc8] sm:$0xff]  ;;  %v1662_v45 = vld [vmem:[%s5476_s7 + $0x1b8] sm:$0xff] }
 0x131   : > { %1348 = vmatpush1.msra.mxu1 %v1212_v42  ;;  %1383 = vmatprep.mubr.f32.mxu1 %v3746_v4  ;;  %v1664_v42 = vld [vmem:[%s5476_s7 + $0x1c8] sm:$0xff] }
 0x132   : > { %1349 = vmatprep.subr.mxu1 %v1211_v43  ;;  %v1629_v43 = vld [vmem:[%s5476_s7 + $0xc0] sm:$0xff] }
 0x133   : > { %1350 = vmatpush1.msra.mxu1 %v1210_v41  ;;  %v1663_v41 = vld [vmem:[%s5476_s7 + $0x1c0] sm:$0xff] }
 0x134   : > { %3253 = vmatmul.mubr.msk.f32.vlgmr.msra.gmra.mxu1 %vm1220_vm2, %v1311_v46  ;;  %1524 = vmatprep.subr.mxu1 %v3746_v4  ;;  %v1627_v46 = vld [vmem:[%s5476_s7 + $0xb0] sm:$0xff] }
 0x135   : > { %1389 = vmatprep.mubr.f32.mxu1 %v3746_v4  ;;  %1525 = vmatpush1.msra.mxu1 %v1518_v47  ;;  %v1661_v47 = vld [vmem:[%s5476_s7 + $0x1b0] sm:$0xff] }
 0x136   : > { %1526 = vmatprep.subr.mxu1 %v3746_v4 }
 0x137   : > { %1527 = vmatpush1.msra.mxu1 %v1517_v48  ;;  %v1626_v48 = vld [vmem:[%s5476_s7 + $0xa8] sm:$0xff] }
 0x138   : > { %3254 = vmatmul.mubr.msk.f32.gmra.mxu1 %vm1220_vm2, %v1312_v49  ;;  %1528 = vmatprep.subr.mxu1 %v3746_v4  ;;  %v1660_v49 = vld [vmem:[%s5476_s7 + $0x1a8] sm:$0xff] }
 0x139   : > { %1529 = vmatpush1.msra.mxu1 %v1516_v51  ;;  %v1625_v51 = vld [vmem:[%s5476_s7 + $0xa0] sm:$0xff] }
 0x13a   : > { %1530 = vmatprep.subr.mxu1 %v3746_v4 }
 0x13b   : > { %1531 = vmatpush1.msra.mxu1 %v1515_v52  ;;  %v1659_v52 = vld [vmem:[%s5476_s7 + $0x1a0] sm:$0xff] }
 0x13c   : > { %1532 = vmatprep.subr.mxu1 %v3746_v4 }
 0x13d   : > { %1533 = vmatpush1.msra.mxu1 %v1514_v53  ;;  %v1624_v53 = vld [vmem:[%s5476_s7 + $0x98] sm:$0xff] }
 0x13e   : > { %1534 = vmatprep.subr.mxu1 %v3746_v4 }
 0x13f   : > { %1535 = vmatpush1.msra.mxu1 %v1513_v54  ;;  %v1658_v54 = vld [vmem:[%s5476_s7 + $0x198] sm:$0xff] }
 0x140   : > { %1536 = vmatprep.subr.mxu1 %v3746_v4 }
 0x141   : > { %1537 = vmatpush1.msra.mxu1 %v1512_v55  ;;  %v1623_v55 = vld [vmem:[%s5476_s7 + $0x90] sm:$0xff] }
 0x142   : > { %1538 = vmatprep.subr.mxu1 %v3746_v4 }
 0x143   : > { %1539 = vmatpush1.msra.mxu1 %v1511_v56  ;;  %v1657_v56 = vld [vmem:[%s5476_s7 + $0x190] sm:$0xff] }
 0x144   : > { %1540 = vmatprep.subr.mxu1 %v3746_v4 }
 0x145   : > { %1541 = vmatpush1.msra.mxu1 %v1510_v57  ;;  %v1622_v57 = vld [vmem:[%s5476_s7 + $0x88] sm:$0xff] }
 0x146   : > { %1542 = vmatprep.subr.mxu1 %v3746_v4 }
 0x147   : > { %1543 = vmatpush1.msra.mxu1 %v1509_v58  ;;  %v1656_v58 = vld [vmem:[%s5476_s7 + $0x188] sm:$0xff] }
 0x148   : > { %1544 = vmatprep.subr.mxu1 %v3746_v4 }
 0x149   : > { %1545 = vmatpush1.msra.mxu1 %v1508_v59  ;;  %v1621_v59 = vld [vmem:[%s5476_s7 + $0x80] sm:$0xff] }
 0x14a   : > { %1546 = vmatprep.subr.mxu1 %v3746_v4 }
 0x14b   : > { %1547 = vmatpush1.msra.mxu1 %v1507_v60  ;;  %v1655_v60 = vld [vmem:[%s5476_s7 + $0x180] sm:$0xff] }
 0x14c   : > { %1548 = vmatprep.subr.mxu1 %v3746_v4 }
 0x14d   : > { %1549 = vmatpush1.msra.mxu1 %v1506_v61  ;;  %v1620_v61 = vld [vmem:[%s5476_s7 + $0x78] sm:$0xff] }
 0x14e   : > { %1550 = vmatprep.subr.mxu1 %v3746_v4 }
 0x14f   : > { %1551 = vmatpush1.msra.mxu1 %v1505_v62  ;;  %v1654_v62 = vld [vmem:[%s5476_s7 + $0x178] sm:$0xff] }
 0x150   : > { %1552 = vmatprep.subr.mxu1 %v3746_v4 }
 0x151   : > { %1553 = vmatpush1.msra.mxu1 %v1504_v0  ;;  %v1653_v0 = vld [vmem:[%s5476_s7 + $0x170] sm:$0xff] }
 0x152   : > { %1554 = vmatprep.subr.mxu1 %v3746_v4 }
 0x153   : > { %1555 = vmatpush1.msra.mxu1 %v1503_v3  ;;  %v1617_v3 = vld [vmem:[%s5476_s7 + $0x60] sm:$0xff] }
 0x154   : > { %1578 = vmatprep.subr.mxu1 %v3746_v4 }
 0x155   : > { %1579 = vmatpush2.msra.mxu1 %v1523_v6  ;;  %v1615_v6 = vld [vmem:[%s5476_s7 + $0x50] sm:$0xff] }
 0x156   : > { %1580 = vmatprep.subr.mxu1 %v3746_v4 }
 0x157   : > { %1581 = vmatpush2.msra.mxu1 %v1522_v9  ;;  %v1613_v9 = vld [vmem:[%s5476_s7 + $0x40] sm:$0xff] }
 0x158   : > { %1582 = vmatprep.subr.mxu1 %v3746_v4 }
 0x159   : > { %1583 = vmatpush2.msra.mxu1 %v1521_v11  ;;  %v1611_v11 = vld [vmem:[%s5476_s7 + $0x30] sm:$0xff] }
 0x15a   : > { %1584 = vmatprep.subr.mxu1 %v3746_v4 }
 0x15b   : > { %1585 = vmatpush2.msra.mxu1 %v1520_v14  ;;  %v1609_v14 = vld [vmem:[%s5476_s7 + $0x20] sm:$0xff] }
 0x15c   : > { %1586 = vmatprep.subr.mxu1 %v3746_v4 }
 0x15d   : > { %1587 = vmatpush2.msra.mxu1 %v1519_v15  ;;  %v1607_v15 = vld [vmem:[%s5476_s7 + $0x10] sm:$0xff] }
 0x15e   : > { %1748 = vmatprep.subr.mxu1 %v1636_v16  ;;  %v1652_v16 = vld [vmem:[%s5476_s7 + $0x168] sm:$0xff] }
 0x1ec   : > { %v1300_v18 = vpop.f32.mrf.mxu1 }
 0x1ee   : > { %v1302_v19 = vpop.f32.mrf.mxu1 }
 0x1f0   : > { %v1306_v20 = vpop.f32.mrf.mxu1 }
 0x1f2   : > { %v1308_v21 = vpop.f32.mrf.mxu1 }
 0x1f4   : > { %v1385_v22 = vpop.f32.mrf.mxu1 }
 0x1f5   : > { %v1396_v25 = vmax.f32 %v1300_v18, %v1385_v22  ;;  %v1651_v18 = vld [vmem:[%s5476_s7 + $0x160] sm:$0xff]  ;;  %v1649_v22 = vld [vmem:[%s5476_s7 + $0x150] sm:$0xff] }
 0x1f6   : > { %v1387_v23 = vpop.f32.mrf.mxu1 }
 0x1f7   : > { %v1397_v24 = vmax.f32 %v1302_v19, %v1387_v23  ;;  %v1605_v19 = vld [vmem:[%s5476_s7] sm:$0xff]  ;;  %v1648_v23 = vld [vmem:[%s5476_s7 + $0x148] sm:$0xff] }
 0x1f8   : > { %v1391_v26 = vpop.f32.mrf.mxu1 }
 0x1f9   : > { %3255 = vmatprep.mubr.msk.f32.mxu0 %vm1421_vm3, %v1397_v24  ;;  %3257 = vmatprep.mubr.msk.f32.mxu1 %vm1421_vm3, %v1397_v24  ;;  %v1398_v35 = vmax.f32 %v1306_v20, %v1391_v26  ;;  %v1650_v20 = vld [vmem:[%s5476_s7 + $0x158] sm:$0xff]  ;;  %v1647_v24 = vld [vmem:[%s5476_s7 + $0x140] sm:$0xff]  ;;  %v1645_v26 = vld [vmem:[%s5476_s7 + $0x130] sm:$0xff] }
 0x1fa   : > { %v1393_v33 = vpop.f32.mrf.mxu1  ;;  %1493 = vmatmul.mubr.f32.vlgmr.msra.gmra.mxu0 %v1396_v25  ;;  %1589 = vmatmul.mubr.f32.vlgmr.msra.gmra.mxu1 %v1396_v25  ;;  %v1646_v25 = vld [vmem:[%s5476_s7 + $0x138] sm:$0xff] }
 0x1fb   : > { %v1399_v34 = vmax.f32 %v1308_v21, %v1393_v33  ;;  %1749 = vmatpush1.msra.mxu1 %v1635_v27  ;;  %1672 = vmatpush1.msra.mxu0 %v1669_v29  ;;  %v1973_v21 = vld [vmem:[%s5476_s7 + $0x3f8] sm:$0xff]  ;;  %v1644_v27 = vld [vmem:[%s5476_s7 + $0x128] sm:$0xff]  ;;  %v1643_v29 = vld [vmem:[%s5476_s7 + $0x120] sm:$0xff] }
 0x1fc   : > { %1750 = vmatprep.subr.mxu1 %v1634_v30  ;;  %1673 = vmatprep.subr.mxu0 %v1668_v32  ;;  %v1642_v30 = vld [vmem:[%s5476_s7 + $0x118] sm:$0xff]  ;;  %v1641_v32 = vld [vmem:[%s5476_s7 + $0x110] sm:$0xff]  ;;  %v1640_v33 = vld [vmem:[%s5476_s7 + $0x108] sm:$0xff] }
 0x1fd   : > { %3256 = vmatprep.mubr.msk.f32.mxu0 %vm1421_vm3, %v1399_v34  ;;  %3258 = vmatprep.mubr.msk.f32.mxu1 %vm1421_vm3, %v1399_v34  ;;  %v1639_v34 = vld [vmem:[%s5476_s7 + $0x100] sm:$0xff] }
 0x1fe   : > { %1498 = vmatmul.mubr.f32.gmra.mxu0 %v1398_v35  ;;  %1594 = vmatmul.mubr.f32.gmra.mxu1 %v1398_v35  ;;  %v1858_v35 = vld [vmem:[%s5476_s7 + $0x2f8] sm:$0xff] }
 0x1ff   : > { %1751 = vmatpush1.msra.mxu1 %v1633_v36  ;;  %1674 = vmatpush1.msra.mxu0 %v1667_v37 }
 0x200   : > { %1752 = vmatprep.subr.mxu1 %v1632_v38  ;;  %1675 = vmatprep.subr.mxu0 %v1666_v31  ;;  %v1972_v31 = vld [vmem:[%s5476_s7 + $0x3f0] sm:$0xff] }
 0x201   : > { %1753 = vmatpush1.msra.mxu1 %v1631_v39  ;;  %1676 = vmatpush1.msra.mxu0 %v1665_v40 }
 0x202   : > { %1754 = vmatprep.subr.mxu1 %v1630_v28  ;;  %1677 = vmatprep.subr.mxu0 %v1664_v42  ;;  %v1971_v28 = vld [vmem:[%s5476_s7 + $0x3e8] sm:$0xff]  ;;  %v1970_v42 = vld [vmem:[%s5476_s7 + $0x3e0] sm:$0xff] }
 0x203   : > { %1755 = vmatpush1.msra.mxu1 %v1629_v43  ;;  %1678 = vmatpush1.msra.mxu0 %v1663_v41 }
 0x204   : > { %1756 = vmatprep.subr.mxu1 %v1628_v44  ;;  %1679 = vmatprep.subr.mxu0 %v1662_v45  ;;  %v1969_v44 = vld [vmem:[%s5476_s7 + $0x3d8] sm:$0xff] }
 0x205   : > { %1757 = vmatpush1.msra.mxu1 %v1627_v46  ;;  %1680 = vmatpush1.msra.mxu0 %v1661_v47  ;;  %v1968_v46 = vld [vmem:[%s5476_s7 + $0x3d0] sm:$0xff] }
 0x206   : > { %1758 = vmatprep.subr.mxu1 %v1626_v48  ;;  %1681 = vmatprep.subr.mxu0 %v1660_v49  ;;  %v1967_v49 = vld [vmem:[%s5476_s7 + $0x3c8] sm:$0xff] }
 0x207   : > { %1759 = vmatpush1.msra.mxu1 %v1625_v51  ;;  %1682 = vmatpush1.msra.mxu0 %v1659_v52  ;;  %v1966_v51 = vld [vmem:[%s5476_s7 + $0x3c0] sm:$0xff]  ;;  %v1965_v52 = vld [vmem:[%s5476_s7 + $0x3b8] sm:$0xff] }
 0x208   : > { %1760 = vmatprep.subr.mxu1 %v1624_v53  ;;  %1683 = vmatprep.subr.mxu0 %v1658_v54  ;;  %v1964_v53 = vld [vmem:[%s5476_s7 + $0x3b0] sm:$0xff]  ;;  %v1963_v54 = vld [vmem:[%s5476_s7 + $0x3a8] sm:$0xff] }
 0x209   : > { %1761 = vmatpush1.msra.mxu1 %v1623_v55  ;;  %1684 = vmatpush1.msra.mxu0 %v1657_v56  ;;  %v1962_v55 = vld [vmem:[%s5476_s7 + $0x3a0] sm:$0xff]  ;;  %v1857_v56 = vld [vmem:[%s5476_s7 + $0x2f0] sm:$0xff] }
 0x20a   : > { %1762 = vmatprep.subr.mxu1 %v1622_v57  ;;  %1685 = vmatprep.subr.mxu0 %v1656_v58  ;;  %v1961_v57 = vld [vmem:[%s5476_s7 + $0x398] sm:$0xff] }
 0x20b   : > { %1763 = vmatpush1.msra.mxu1 %v1621_v59  ;;  %1686 = vmatpush1.msra.mxu0 %v1655_v60  ;;  %v1856_v60 = vld [vmem:[%s5476_s7 + $0x2e8] sm:$0xff] }
 0x20c   : > { %1764 = vmatprep.subr.mxu1 %v1620_v61  ;;  %1687 = vmatprep.subr.mxu0 %v1654_v62  ;;  %v1855_v61 = vld [vmem:[%s5476_s7 + $0x2e0] sm:$0xff]  ;;  %v1960_v62 = vld [vmem:[%s5476_s7 + $0x390] sm:$0xff] }
 0x20d   : > { %1765 = vmatpush1.msra.mxu1 %v1619_v63  ;;  %1688 = vmatpush1.msra.mxu0 %v1653_v0  ;;  %v1854_v63 = vld [vmem:[%s5476_s7 + $0x2d8] sm:$0xff]  ;;  %v1853_v0 = vld [vmem:[%s5476_s7 + $0x2d0] sm:$0xff] }
 0x20e   : > { %1766 = vmatprep.subr.mxu1 %v1618_v2  ;;  %1812 = vmatprep.mubr.f32.mxu1 %v3746_v4  ;;  %v1959_v2 = vld [vmem:[%s5476_s7 + $0x388] sm:$0xff] }
 0x20f   : > { %1767 = vmatpush1.msra.mxu1 %v1617_v3  ;;  %1735 = vmatprep.mubr.f32.mxu0 %v3746_v4 }
 0x210   : > { %1768 = vmatprep.subr.mxu1 %v1616_v5  ;;  %1689 = vmatprep.subr.mxu0 %v1652_v16  ;;  %v1852_v5 = vld [vmem:[%s5476_s7 + $0x2c8] sm:$0xff]  ;;  %v1847_v16 = vld [vmem:[%s5476_s7 + $0x2a0] sm:$0xff] }
 0x211   : > { %1769 = vmatpush1.msra.mxu1 %v1615_v6  ;;  %1690 = vmatpush1.msra.mxu0 %v1651_v18  ;;  %v1958_v6 = vld [vmem:[%s5476_s7 + $0x380] sm:$0xff]  ;;  %v1846_v18 = vld [vmem:[%s5476_s7 + $0x298] sm:$0xff] }
 0x212   : > { %1770 = vmatprep.subr.mxu1 %v1614_v7  ;;  %1691 = vmatprep.subr.mxu0 %v1650_v20  ;;  %v1851_v7 = vld [vmem:[%s5476_s7 + $0x2c0] sm:$0xff]  ;;  %v1845_v20 = vld [vmem:[%s5476_s7 + $0x290] sm:$0xff] }
 0x213   : > { %1771 = vmatpush1.msra.mxu1 %v1613_v9  ;;  %1692 = vmatpush1.msra.mxu0 %v1649_v22  ;;  %v1957_v9 = vld [vmem:[%s5476_s7 + $0x378] sm:$0xff]  ;;  %v1844_v22 = vld [vmem:[%s5476_s7 + $0x288] sm:$0xff] }
 0x214   : > { %1772 = vmatprep.subr.mxu1 %v1612_v10  ;;  %1693 = vmatprep.subr.mxu0 %v1648_v23  ;;  %v1850_v10 = vld [vmem:[%s5476_s7 + $0x2b8] sm:$0xff]  ;;  %v1950_v23 = vld [vmem:[%s5476_s7 + $0x340] sm:$0xff] }
 0x215   : > { %1773 = vmatpush1.msra.mxu1 %v1611_v11  ;;  %1694 = vmatpush1.msra.mxu0 %v1647_v24  ;;  %v1956_v11 = vld [vmem:[%s5476_s7 + $0x370] sm:$0xff]  ;;  %v1843_v24 = vld [vmem:[%s5476_s7 + $0x280] sm:$0xff] }
 0x216   : > { %1774 = vmatprep.subr.mxu1 %v1610_v13  ;;  %1695 = vmatprep.subr.mxu0 %v1646_v25  ;;  %v1849_v13 = vld [vmem:[%s5476_s7 + $0x2b0] sm:$0xff]  ;;  %v1949_v25 = vld [vmem:[%s5476_s7 + $0x338] sm:$0xff] }
 0x217   : > { %1775 = vmatpush1.msra.mxu1 %v1609_v14  ;;  %1696 = vmatpush1.msra.mxu0 %v1645_v26  ;;  %v1955_v14 = vld [vmem:[%s5476_s7 + $0x368] sm:$0xff]  ;;  %v1842_v26 = vld [vmem:[%s5476_s7 + $0x278] sm:$0xff] }
 0x218   : > { %1776 = vmatprep.subr.mxu1 %v1608_v12  ;;  %1697 = vmatprep.subr.mxu0 %v1644_v27  ;;  %v1848_v12 = vld [vmem:[%s5476_s7 + $0x2a8] sm:$0xff]  ;;  %v1948_v27 = vld [vmem:[%s5476_s7 + $0x330] sm:$0xff] }
 0x219   : > { %1777 = vmatpush1.msra.mxu1 %v1607_v15  ;;  %1698 = vmatpush1.msra.mxu0 %v1643_v29  ;;  %v1954_v15 = vld [vmem:[%s5476_s7 + $0x360] sm:$0xff]  ;;  %v1841_v29 = vld [vmem:[%s5476_s7 + $0x270] sm:$0xff] }
 0x21a   : > { %1778 = vmatprep.subr.mxu1 %v1606_v17  ;;  %1699 = vmatprep.subr.mxu0 %v1642_v30  ;;  %v1953_v17 = vld [vmem:[%s5476_s7 + $0x358] sm:$0xff]  ;;  %v1947_v30 = vld [vmem:[%s5476_s7 + $0x328] sm:$0xff] }
 0x21b   : > { %1779 = vmatpush1.msra.mxu1 %v1605_v19  ;;  %1700 = vmatpush1.msra.mxu0 %v1641_v32  ;;  %v1952_v19 = vld [vmem:[%s5476_s7 + $0x350] sm:$0xff]  ;;  %v1840_v32 = vld [vmem:[%s5476_s7 + $0x268] sm:$0xff] }
 0x21c   : > { %1974 = vmatprep.subr.mxu1 %v1973_v21  ;;  %1701 = vmatprep.subr.mxu0 %v1640_v33  ;;  %v1951_v21 = vld [vmem:[%s5476_s7 + $0x348] sm:$0xff]  ;;  %v1946_v33 = vld [vmem:[%s5476_s7 + $0x320] sm:$0xff] }
 0x21d   : > { %1702 = vmatpush1.msra.mxu0 %v1639_v34  ;;  %v1839_v34 = vld [vmem:[%s5476_s7 + $0x260] sm:$0xff] }
 0x21e   : > { %1859 = vmatprep.subr.mxu0 %v1858_v35  ;;  %v1945_v35 = vld [vmem:[%s5476_s7 + $0x318] sm:$0xff] }
 0x2ba   : > { %v1494_v36 = vpop.f32.mrf.mxu0  ;;  %v1590_v37 = vpop.f32.mrf.mxu1 }
 0x2bb   : > { %v1599_v38 = vmax.f32 %v1494_v36, %v1590_v37  ;;  %v1838_v36 = vld [vmem:[%s5476_s7 + $0x258] sm:$0xff]  ;;  %v1944_v37 = vld [vmem:[%s5476_s7 + $0x310] sm:$0xff] }
 0x2bc   : > { %v1496_v39 = vpop.f32.mrf.mxu0  ;;  %v1592_v40 = vpop.f32.mrf.mxu1 }
 0x2bd   : > { %1601 = vst [vmem:[#allocation2] sm:$0xff] %v1599_v38  ;;  %1813 = vmatmul.mubr.f32.vlgmr.msra.gmra.mxu1 %v1599_v38  ;;  %v1837_v38 = vld [vmem:[%s5476_s7 + $0x250] sm:$0xff]  ;;  %v1836_v39 = vld [vmem:[%s5476_s7 + $0x248] sm:$0xff]  ;;  %v1942_v40 = vld [vmem:[%s5476_s7 + $0x300] sm:$0xff] }
 0x2be   : > { %v1499_v43 = vpop.f32.mrf.mxu0  ;;  %v1595_v41 = vpop.f32.mrf.mxu1  ;;  %1975 = vmatpush1.msra.mxu1 %v1972_v31  ;;  %1818 = vmatprep.mubr.f32.mxu1 %v3746_v4  ;;  %v1943_v31 = vld [vmem:[%s5476_s7 + $0x308] sm:$0xff] }
 0x2bf   : > { %v1600_v45 = vmax.f32 %v1499_v43, %v1595_v41  ;;  %1976 = vmatprep.subr.mxu1 %v1971_v28  ;;  %v1835_v28 = vld [vmem:[%s5476_s7 + $0x240] sm:$0xff]  ;;  %v1833_v43 = vld [vmem:[%s5476_s7 + $0x230] sm:$0xff]  ;;  %v1832_v41 = vld [vmem:[%s5476_s7 + $0x228] sm:$0xff] }
 0x2c0   : > { %v1501_v47 = vpop.f32.mrf.mxu0  ;;  %v1597_v48 = vpop.f32.mrf.mxu1  ;;  %1977 = vmatpush1.msra.mxu1 %v1970_v42  ;;  %v1834_v42 = vld [vmem:[%s5476_s7 + $0x238] sm:$0xff] }
 0x2c1   : > { %1602 = vst [vmem:[#allocation2 + $0x8] sm:$0x3f] %v1600_v45  ;;  %1978 = vmatprep.subr.mxu1 %v1969_v44  ;;  %v1831_v45 = vld [vmem:[%s5476_s7 + $0x220] sm:$0xff]  ;;  %v1829_v47 = vld [vmem:[%s5476_s7 + $0x210] sm:$0xff]  ;;  %v1828_v48 = vld [vmem:[%s5476_s7 + $0x208] sm:$0xff] }
 0x2c2   : > { %1979 = vmatpush1.msra.mxu1 %v1968_v46  ;;  %v1830_v46 = vld [vmem:[%s5476_s7 + $0x218] sm:$0xff] }
 0x2c3   : > { %1980 = vmatprep.subr.mxu1 %v1967_v49 }
 0x2c4   : > { %1981 = vmatpush1.msra.mxu1 %v1966_v51  ;;  %v1827_v51 = vld [vmem:[%s5476_s7 + $0x200] sm:$0xff] }
 0x2c5   : > { %1982 = vmatprep.subr.mxu1 %v1965_v52  ;;  %v2088_v52 = vld [vmem:[%s5476_s7 + $0x4f8] sm:$0xff] }
 0x2c6   : > { %1983 = vmatpush1.msra.mxu1 %v1964_v53  ;;  %v2087_v53 = vld [vmem:[%s5476_s7 + $0x4f0] sm:$0xff] }
 0x2c7   : > { %1984 = vmatprep.subr.mxu1 %v1963_v54 }
 0x2c8   : > { %v1637_v58 = vld [vmem:[#allocation2 + $0x1] sm:$0xff]  ;;  %1985 = vmatpush1.msra.mxu1 %v1962_v55  ;;  %v1638_v3 = vld [vmem:[#allocation2 + $0x9] sm:$0x3]  ;;  %v1941_v49 = vld [vmem:[#allocation2 + $0xb] sm:$0x3] }
 0x2c9   : > { %v1604_v59 = vld [vmem:[#allocation2 + $0x8] sm:$0x3]  ;;  %1736 = vmatmul.mubr.f32.vlgmr.msra.gmra.mxu0 %v1637_v58  ;;  %1986 = vmatprep.subr.mxu1 %v1961_v57  ;;  %v2084_v57 = vld [vmem:[%s5476_s7 + $0x4d8] sm:$0xff]  ;;  %v2083_v58 = vld [vmem:[%s5476_s7 + $0x4d0] sm:$0xff] }
 0x2ca   : > { %1819 = vmatmul.mubr.f32.gmra.mxu1 %v1604_v59  ;;  %1860 = vmatpush1.msra.mxu0 %v1857_v56  ;;  %v1940_v44 = vld [vmem:[#allocation2 + $0x3] sm:$0xff] }
 0x2cb   : > { %1741 = vmatprep.mubr.f32.mxu0 %v3746_v4  ;;  %1861 = vmatprep.subr.mxu0 %v1856_v60  ;;  %v1825_v54 = vld [vmem:[#allocation2 + $0x2] sm:$0xff]  ;;  %v1826_v59 = vld [vmem:[#allocation2 + $0xa] sm:$0x3] }
 0x2cc   : > { %1862 = vmatpush1.msra.mxu0 %v1855_v61  ;;  %1987 = vmatpush1.msra.mxu1 %v1960_v62  ;;  %v2086_v55 = vld [vmem:[%s5476_s7 + $0x4e8] sm:$0xff]  ;;  %v2085_v56 = vld [vmem:[%s5476_s7 + $0x4e0] sm:$0xff]  ;;  %v2080_v62 = vld [vmem:[%s5476_s7 + $0x4b8] sm:$0xff] }
 0x2cd   : > { %1863 = vmatprep.subr.mxu0 %v1854_v63  ;;  %1742 = vmatmul.mubr.f32.gmra.mxu0 %v1638_v3  ;;  %v2082_v60 = vld [vmem:[%s5476_s7 + $0x4c8] sm:$0xff]  ;;  %v2081_v61 = vld [vmem:[%s5476_s7 + $0x4c0] sm:$0xff]  ;;  %v2079_v63 = vld [vmem:[%s5476_s7 + $0x4b0] sm:$0xff] }
 0x2ce   : > { %1864 = vmatpush1.msra.mxu0 %v1853_v0  ;;  %1988 = vmatprep.subr.mxu1 %v1959_v2  ;;  %v2078_v0 = vld [vmem:[%s5476_s7 + $0x4a8] sm:$0xff]  ;;  %v2077_v2 = vld [vmem:[%s5476_s7 + $0x4a0] sm:$0xff]  ;;  %v2076_v3 = vld [vmem:[%s5476_s7 + $0x498] sm:$0xff] }
 0x2cf   : > { %1865 = vmatprep.subr.mxu0 %v1852_v5  ;;  %1989 = vmatpush1.msra.mxu1 %v1958_v6  ;;  %v2075_v5 = vld [vmem:[%s5476_s7 + $0x490] sm:$0xff]  ;;  %v2074_v6 = vld [vmem:[%s5476_s7 + $0x488] sm:$0xff] }
 0x2d0   : > { %1866 = vmatpush1.msra.mxu0 %v1851_v7  ;;  %1990 = vmatprep.subr.mxu1 %v1957_v9  ;;  %v2073_v7 = vld [vmem:[%s5476_s7 + $0x480] sm:$0xff]  ;;  %v2072_v9 = vld [vmem:[%s5476_s7 + $0x478] sm:$0xff] }
 0x2d1   : > { %1867 = vmatprep.subr.mxu0 %v1850_v10  ;;  %1991 = vmatpush1.msra.mxu1 %v1956_v11  ;;  %v2071_v10 = vld [vmem:[%s5476_s7 + $0x470] sm:$0xff]  ;;  %v2070_v11 = vld [vmem:[%s5476_s7 + $0x468] sm:$0xff] }
 0x2d2   : > { %1868 = vmatpush1.msra.mxu0 %v1849_v13  ;;  %1992 = vmatprep.subr.mxu1 %v1955_v14  ;;  %v2069_v13 = vld [vmem:[%s5476_s7 + $0x460] sm:$0xff]  ;;  %v2068_v14 = vld [vmem:[%s5476_s7 + $0x458] sm:$0xff] }
 0x2d3   : > { %1869 = vmatprep.subr.mxu0 %v1848_v12  ;;  %1993 = vmatpush1.msra.mxu1 %v1954_v15  ;;  %v2067_v12 = vld [vmem:[%s5476_s7 + $0x450] sm:$0xff]  ;;  %v2066_v15 = vld [vmem:[%s5476_s7 + $0x448] sm:$0xff] }
 0x2d4   : > { %1870 = vmatpush1.msra.mxu0 %v1847_v16  ;;  %1994 = vmatprep.subr.mxu1 %v1953_v17  ;;  %v2065_v16 = vld [vmem:[%s5476_s7 + $0x440] sm:$0xff]  ;;  %v2064_v17 = vld [vmem:[%s5476_s7 + $0x438] sm:$0xff] }
 0x2d5   : > { %1871 = vmatprep.subr.mxu0 %v1846_v18  ;;  %1995 = vmatpush1.msra.mxu1 %v1952_v19  ;;  %v2063_v18 = vld [vmem:[%s5476_s7 + $0x430] sm:$0xff]  ;;  %v2062_v19 = vld [vmem:[%s5476_s7 + $0x428] sm:$0xff] }
 0x2d6   : > { %1872 = vmatpush1.msra.mxu0 %v1845_v20  ;;  %1996 = vmatprep.subr.mxu1 %v1951_v21  ;;  %v2061_v20 = vld [vmem:[%s5476_s7 + $0x420] sm:$0xff]  ;;  %v2060_v21 = vld [vmem:[%s5476_s7 + $0x418] sm:$0xff] }
 0x2d7   : > { %1873 = vmatprep.subr.mxu0 %v1844_v22  ;;  %1997 = vmatpush1.msra.mxu1 %v1950_v23  ;;  %v2059_v22 = vld [vmem:[%s5476_s7 + $0x410] sm:$0xff]  ;;  %v2058_v23 = vld [vmem:[%s5476_s7 + $0x408] sm:$0xff] }
 0x2d8   : > { %1874 = vmatpush1.msra.mxu0 %v1843_v24  ;;  %1998 = vmatprep.subr.mxu1 %v1949_v25  ;;  %v2057_v24 = vld [vmem:[%s5476_s7 + $0x400] sm:$0xff] }
 0x2d9   : > { %1875 = vmatprep.subr.mxu0 %v1842_v26  ;;  %1999 = vmatpush1.msra.mxu1 %v1948_v27  ;;  %v2055_v25 = vld [vmem:[#allocation2 + $0x4] sm:$0xff]  ;;  %v2056_v26 = vld [vmem:[#allocation2 + $0xc] sm:$0x3]  ;;  %v2458_v27 = vld [vmem:[%s5481_s12 + $0x78] sm:$0xff] }
 0x2da   : > { %1876 = vmatpush1.msra.mxu0 %v1841_v29  ;;  %2000 = vmatprep.subr.mxu1 %v1947_v30  ;;  %v2457_v29 = vld [vmem:[%s5481_s12 + $0x70] sm:$0xff]  ;;  %v2456_v30 = vld [vmem:[%s5481_s12 + $0x68] sm:$0xff] }
 0x2db   : > { %1877 = vmatprep.subr.mxu0 %v1840_v32  ;;  %2001 = vmatpush1.msra.mxu1 %v1946_v33  ;;  %v2455_v32 = vld [vmem:[%s5481_s12 + $0x60] sm:$0xff]  ;;  %v2454_v33 = vld [vmem:[%s5481_s12 + $0x58] sm:$0xff] }
 0x2dc   : > { %1878 = vmatpush1.msra.mxu0 %v1839_v34  ;;  %2002 = vmatprep.subr.mxu1 %v1945_v35  ;;  %v2453_v34 = vld [vmem:[%s5481_s12 + $0x50] sm:$0xff]  ;;  %v2452_v35 = vld [vmem:[%s5481_s12 + $0x48] sm:$0xff] }
 0x2dd   : > { %1879 = vmatprep.subr.mxu0 %v1838_v36  ;;  %2003 = vmatpush1.msra.mxu1 %v1944_v37  ;;  %v2451_v36 = vld [vmem:[%s5481_s12 + $0x40] sm:$0xff]  ;;  %v2450_v37 = vld [vmem:[%s5481_s12 + $0x38] sm:$0xff] }
 0x2de   : > { %1880 = vmatpush1.msra.mxu0 %v1837_v38  ;;  %2004 = vmatprep.subr.mxu1 %v1943_v31  ;;  %v2449_v38 = vld [vmem:[%s5481_s12 + $0x30] sm:$0xff]  ;;  %v2448_v31 = vld [vmem:[%s5481_s12 + $0x28] sm:$0xff] }
 0x2df   : > { %1881 = vmatprep.subr.mxu0 %v1836_v39  ;;  %2005 = vmatpush1.msra.mxu1 %v1942_v40  ;;  %v2447_v39 = vld [vmem:[%s5481_s12 + $0x20] sm:$0xff]  ;;  %v2446_v40 = vld [vmem:[%s5481_s12 + $0x18] sm:$0xff] }
 0x2e0   : > { %1882 = vmatpush1.msra.mxu0 %v1835_v28  ;;  %2038 = vmatprep.mubr.f32.mxu1 %v3746_v4  ;;  %v2445_v28 = vld [vmem:[%s5481_s12 + $0x10] sm:$0xff] }
 0x2e1   : > { %1883 = vmatprep.subr.mxu0 %v1834_v42  ;;  %2039 = vmatmul.mubr.f32.vlgmr.msra.gmra.mxu1 %v1940_v44  ;;  %v2444_v42 = vld [vmem:[%s5481_s12 + $0x8] sm:$0xff] }
 0x2e2   : > { %1884 = vmatpush1.msra.mxu0 %v1833_v43  ;;  %1923 = vmatprep.mubr.f32.mxu0 %v3746_v4 }
 0x2e3   : > { %1885 = vmatprep.subr.mxu0 %v1832_v41  ;;  %2044 = vmatprep.mubr.f32.mxu1 %v3746_v4 }
 0x2e4   : > { %1886 = vmatpush1.msra.mxu0 %v1831_v45 }
 0x2e5   : > { %1887 = vmatprep.subr.mxu0 %v1830_v46  ;;  %2045 = vmatmul.mubr.f32.gmra.mxu1 %v1941_v49 }
 0x2e6   : > { %1888 = vmatpush1.msra.mxu0 %v1829_v47  ;;  %2266 = vmatprep.mubr.f32.mxu1 %v3746_v4 }
 0x2e7   : > { %1889 = vmatprep.subr.mxu0 %v1828_v48 }
 0x2e8   : > { %1890 = vmatpush1.msra.mxu0 %v1827_v51 }
 0x2e9   : > { %1924 = vmatmul.mubr.f32.vlgmr.msra.gmra.mxu0 %v1825_v54  ;;  %2089 = vmatprep.subr.mxu0 %v2088_v52 }
 0x2ea   : > { %2090 = vmatpush1.msra.mxu0 %v2087_v53  ;;  %1929 = vmatprep.mubr.f32.mxu0 %v3746_v4 }
 0x2eb   : > { %2091 = vmatprep.subr.mxu0 %v2086_v55 }
 0x2ec   : > { %2092 = vmatpush1.msra.mxu0 %v2085_v56 }
 0x2ed   : > { %1930 = vmatmul.mubr.f32.gmra.mxu0 %v1826_v59  ;;  %2093 = vmatprep.subr.mxu0 %v2084_v57 }
 0x2ee   : > { %2094 = vmatpush1.msra.mxu0 %v2083_v58  ;;  %2153 = vmatprep.mubr.f32.mxu0 %v3746_v4 }
 0x2ef   : > { %2095 = vmatprep.subr.mxu0 %v2082_v60 }
 0x2f0   : > { %2096 = vmatpush1.msra.mxu0 %v2081_v61 }
 0x2f1   : > { %2097 = vmatprep.subr.mxu0 %v2080_v62 }
 0x2f2   : > { %2098 = vmatpush1.msra.mxu0 %v2079_v63 }
 0x2f3   : > { %2099 = vmatprep.subr.mxu0 %v2078_v0 }
 0x2f4   : > { %2100 = vmatpush1.msra.mxu0 %v2077_v2 }
 0x2f5   : > { %2101 = vmatprep.subr.mxu0 %v2076_v3 }
 0x2f6   : > { %2102 = vmatpush1.msra.mxu0 %v2075_v5 }
 0x2f7   : > { %2103 = vmatprep.subr.mxu0 %v2074_v6  ;;  %v2170_v6 = vld [vmem:[%s5477_s8] sm:$0x3] }
 0x2f8   : > { %2104 = vmatpush1.msra.mxu0 %v2073_v7 }
 0x2f9   : > { %2105 = vmatprep.subr.mxu0 %v2072_v9 }
 0x2fa   : > { %2106 = vmatpush1.msra.mxu0 %v2071_v10 }
 0x2fb   : > { %2107 = vmatprep.subr.mxu0 %v2070_v11 }
 0x2fc   : > { %2108 = vmatpush1.msra.mxu0 %v2069_v13 }
 0x2fd   : > { %2109 = vmatprep.subr.mxu0 %v2068_v14 }
 0x2fe   : > { %2110 = vmatpush1.msra.mxu0 %v2067_v12  ;;  %v2179_v12 = vrot.slane %v2170_v6, %v1198_v8  ;;  %v2190_v8 = vld [vmem:[%s5478_s9] sm:$0x1f] }
 0x2ff   : > { %2111 = vmatprep.subr.mxu0 %v2066_v15 }
 0x300   : > { %2112 = vmatpush1.msra.mxu0 %v2065_v16 }
 0x301   : > { %2113 = vmatprep.subr.mxu0 %v2064_v17 }
 0x302   : > { %2114 = vmatpush1.msra.mxu0 %v2063_v18  ;;  %v2175_v18 = vrot.slane %v2170_v6, %v1194_v1  ;;  %v2365_v1 = vld [vmem:[%s5480_s11 + $0x78] sm:$0xff] }
 0x303   : > { %2115 = vmatprep.subr.mxu0 %v2062_v19  ;;  %v2548_v6 = vld [vmem:[%s5482_s13 + $0x58] sm:$0xff] }
 0x304   : > { %2116 = vmatpush1.msra.mxu0 %v2061_v20 }
 0x305   : > { %2117 = vmatprep.subr.mxu0 %v2060_v21 }
 0x306   : > { %2118 = vmatpush1.msra.mxu0 %v2059_v22 }
 0x307   : > { %2119 = vmatprep.subr.mxu0 %v2058_v23 }
 0x308   : > { %2120 = vmatpush1.msra.mxu0 %v2057_v24 }
 0x309   : > { %2154 = vmatmul.mubr.f32.vlgmr.msra.gmra.mxu0 %v2055_v25  ;;  %2463 = vmatprep.subr.mxu0 %v3746_v4 }
 0x30a   : > { %2159 = vmatprep.mubr.f32.mxu0 %v3746_v4  ;;  %2464 = vmatpush1.msra.mxu0 %v2458_v27 }
 0x30b   : > { %2465 = vmatprep.subr.mxu0 %v3746_v4 }
 0x30c   : > { %2466 = vmatpush1.msra.mxu0 %v2457_v29 }
 0x30d   : > { %2160 = vmatmul.mubr.f32.gmra.mxu0 %v2056_v26  ;;  %2467 = vmatprep.subr.mxu0 %v3746_v4 }
 0x30e   : > { %2468 = vmatpush1.msra.mxu0 %v2456_v30  ;;  %v2364_v30 = vld [vmem:[%s5480_s11 + $0x70] sm:$0xff] }
 0x30f   : > { %2469 = vmatprep.subr.mxu0 %v3746_v4 }
 0x310   : > { %2470 = vmatpush1.msra.mxu0 %v2455_v32  ;;  %v2363_v32 = vld [vmem:[%s5480_s11 + $0x68] sm:$0xff] }
 0x311   : > { %2471 = vmatprep.subr.mxu0 %v3746_v4 }
 0x312   : > { %2472 = vmatpush1.msra.mxu0 %v2454_v33  ;;  %v2362_v33 = vld [vmem:[%s5480_s11 + $0x60] sm:$0xff] }
 0x313   : > { %2473 = vmatprep.subr.mxu0 %v3746_v4 }
 0x314   : > { %2474 = vmatpush1.msra.mxu0 %v2453_v34  ;;  %v2361_v34 = vld [vmem:[%s5480_s11 + $0x58] sm:$0xff] }
 0x315   : > { %2475 = vmatprep.subr.mxu0 %v3746_v4 }
 0x316   : > { %2476 = vmatpush1.msra.mxu0 %v2452_v35  ;;  %v2360_v35 = vld [vmem:[%s5480_s11 + $0x50] sm:$0xff] }
 0x317   : > { %2477 = vmatprep.subr.mxu0 %v3746_v4 }
 0x318   : > { %2478 = vmatpush1.msra.mxu0 %v2451_v36  ;;  %v2359_v36 = vld [vmem:[%s5480_s11 + $0x48] sm:$0xff] }
 0x319   : > { %2479 = vmatprep.subr.mxu0 %v3746_v4 }
 0x31a   : > { %2480 = vmatpush1.msra.mxu0 %v2450_v37  ;;  %v2358_v37 = vld [vmem:[%s5480_s11 + $0x40] sm:$0xff] }
 0x31b   : > { %2481 = vmatprep.subr.mxu0 %v3746_v4 }
 0x31c   : > { %2482 = vmatpush1.msra.mxu0 %v2449_v38  ;;  %v2357_v38 = vld [vmem:[%s5480_s11 + $0x38] sm:$0xff] }
 0x31d   : > { %2483 = vmatprep.subr.mxu0 %v3746_v4 }
 0x31e   : > { %2484 = vmatpush1.msra.mxu0 %v2448_v31  ;;  %v2356_v31 = vld [vmem:[%s5480_s11 + $0x30] sm:$0xff] }
 0x31f   : > { %2485 = vmatprep.subr.mxu0 %v3746_v4 }
 0x320   : > { %2486 = vmatpush1.msra.mxu0 %v2447_v39  ;;  %v2355_v39 = vld [vmem:[%s5480_s11 + $0x28] sm:$0xff] }
 0x321   : > { %2487 = vmatprep.subr.mxu0 %v3746_v4 }
 0x322   : > { %2488 = vmatpush1.msra.mxu0 %v2446_v40  ;;  %v2354_v40 = vld [vmem:[%s5480_s11 + $0x20] sm:$0xff] }
 0x323   : > { %2489 = vmatprep.subr.mxu0 %v3746_v4 }
 0x324   : > { %2490 = vmatpush1.msra.mxu0 %v2445_v28  ;;  %v2353_v28 = vld [vmem:[%s5480_s11 + $0x18] sm:$0xff] }
 0x325   : > { %2491 = vmatprep.subr.mxu0 %v3746_v4 }
 0x326   : > { %2492 = vmatpush1.msra.mxu0 %v2444_v42  ;;  %v2352_v42 = vld [vmem:[%s5480_s11 + $0x10] sm:$0xff] }
 0x327   : > { %2493 = vmatprep.subr.mxu0 %v3746_v4 }
 0x37d   : > { %v1814_v44 = vpop.f32.mrf.mxu1 }
 0x37f   : > { %v1816_v46 = vpop.f32.mrf.mxu1 }
 0x389   : > { %v1737_v43 = vpop.f32.mrf.mxu0 }
 0x38a   : > { %v1820_v48 = vpop.f32.mrf.mxu1  ;;  %v1815_v58 = vadd.f32 %v1814_v44, %v1737_v43  ;;  %v2351_v43 = vld [vmem:[%s5480_s11 + $0x8] sm:$0xff]  ;;  %v2443_v44 = vld [vmem:[%s5481_s12] sm:$0xff] }
 0x38b   : > { %v1739_v41 = vpop.f32.mrf.mxu0  ;;  %2494 = vmatpush1.msra.mxu0 %v2443_v44  ;;  %v2812_v44 = vld [vmem:[%s5482_s13 + $0x1d8] sm:$0xff] }
 0x38c   : > { %v1822_v51 = vpop.f32.mrf.mxu1  ;;  %v1817_v56 = vadd.f32 %v1816_v46, %v1739_v41  ;;  %v2350_v41 = vld [vmem:[%s5480_s11] sm:$0xff]  ;;  %2519 = vmatprep.subr.mxu0 %v3746_v4  ;;  %v2462_v46 = vld [vmem:[%s5481_s12 + $0x98] sm:$0xff] }
 0x38d   : > { %v1743_v45 = vpop.f32.mrf.mxu0  ;;  %2520 = vmatpush2.msra.mxu0 %v2462_v46  ;;  %v2811_v46 = vld [vmem:[%s5482_s13 + $0x1d0] sm:$0xff] }
 0x38e   : > { %v1821_v57 = vadd.f32 %v1820_v48, %v1743_v45  ;;  %v2369_v45 = vld [vmem:[%s5480_s11 + $0x98] sm:$0xff]  ;;  %2521 = vmatprep.subr.mxu0 %v3746_v4  ;;  %v2461_v48 = vld [vmem:[%s5481_s12 + $0x90] sm:$0xff] }
 0x38f   : > { %v1745_v47 = vpop.f32.mrf.mxu0  ;;  %2522 = vmatpush2.msra.mxu0 %v2461_v48  ;;  %v2810_v48 = vld [vmem:[%s5482_s13 + $0x1c8] sm:$0xff] }
 0x390   : > { %v1823_v60 = vadd.f32 %v1822_v51, %v1745_v47  ;;  %v2368_v47 = vld [vmem:[%s5480_s11 + $0x90] sm:$0xff]  ;;  %2523 = vmatprep.subr.mxu0 %v3746_v4  ;;  %v2460_v51 = vld [vmem:[%s5481_s12 + $0x88] sm:$0xff] }
 0x391   : > { %2524 = vmatpush2.msra.mxu0 %v2460_v51  ;;  %v2809_v51 = vld [vmem:[%s5482_s13 + $0x1c0] sm:$0xff] }
 0x392   : > { %2525 = vmatprep.subr.mxu0 %v3746_v4 }
 0x3a1   : > { %v2040_v53 = vpop.f32.mrf.mxu1 }
 0x3a3   : > { %v2042_v55 = vpop.f32.mrf.mxu1 }
 0x3a5   : > { %v2046_v0 = vpop.f32.mrf.mxu1 }
 0x3a7   : > { %v2048_v10 = vpop.f32.mrf.mxu1 }
 0x3a9   : > { %v1925_v49 = vpop.f32.mrf.mxu0 }
 0x3aa   : > { %v1936_v63 = vadd.f32 %v1925_v49, %v1815_v58  ;;  %v2367_v49 = vld [vmem:[%s5480_s11 + $0x88] sm:$0xff] }
 0x3ab   : > { %v1927_v52 = vpop.f32.mrf.mxu0 }
 0x3ac   : > { %v1937_v61 = vadd.f32 %v1927_v52, %v1817_v56  ;;  %v2051_v11 = vadd.f32 %v2040_v53, %v1936_v63  ;;  %v2366_v52 = vld [vmem:[%s5480_s11 + $0x80] sm:$0xff]  ;;  %v2639_v63 = vld [vmem:[%s5482_s13 + $0xf0] sm:$0xff] }
 0x3ad   : > { %v1931_v54 = vpop.f32.mrf.mxu0  ;;  %v2459_v53 = vld [vmem:[%s5481_s12 + $0x80] sm:$0xff] }
 0x3ae   : > { %v1938_v62 = vadd.f32 %v1931_v54, %v1821_v57  ;;  %v2052_v7 = vadd.f32 %v2042_v55, %v1937_v61  ;;  %2526 = vmatpush2.msra.mxu0 %v2459_v53  ;;  %v2640_v61 = vld [vmem:[%s5482_s13 + $0xf8] sm:$0xff] }
 0x3af   : > { %v1933_v59 = vpop.f32.mrf.mxu0  ;;  %3425 = vmatprep.subr.mxu0 %v3746_v4  ;;  %v2808_v53 = vld [vmem:[%s5482_s13 + $0x1b8] sm:$0xff] }
 0x3b0   : > { %v1939_v3 = vadd.f32 %v1933_v59, %v1823_v60  ;;  %v2053_v9 = vadd.f32 %v2046_v0, %v1938_v62  ;;  %v2552_v60 = vld [vmem:[%s5482_s13 + $0x78] sm:$0xff]  ;;  %v2551_v62 = vld [vmem:[%s5482_s13 + $0x70] sm:$0xff]  ;;  %v2550_v0 = vld [vmem:[%s5482_s13 + $0x68] sm:$0xff] }
 0x3b2   : > { %v2054_v16 = vadd.f32 %v2048_v10, %v1939_v3  ;;  %v2549_v3 = vld [vmem:[%s5482_s13 + $0x60] sm:$0xff]  ;;  %v2635_v10 = vld [vmem:[%s5482_s13 + $0xd0] sm:$0xff] }
 0x3c9   : > { %v2155_v2 = vpop.f32.mrf.mxu0 }
 0x3ca   : > { %v2166_v17 = vadd.f32 %v2155_v2, %v2051_v11  ;;  %v2638_v2 = vld [vmem:[%s5482_s13 + $0xe8] sm:$0xff] }
 0x3cb   : > { %v2157_v5 = vpop.f32.mrf.mxu0  ;;  %v2546_v11 = vld [vmem:[%s5482_s13 + $0x48] sm:$0xff] }
 0x3cc   : > { %v2167_v14 = vadd.f32 %v2157_v5, %v2052_v7  ;;  %v2182_v24 = vadd.f32 %v2175_v18, %v2166_v17  ;;  %v2637_v5 = vld [vmem:[%s5482_s13 + $0xe0] sm:$0xff]  ;;  %v2636_v7 = vld [vmem:[%s5482_s13 + $0xd8] sm:$0xff]  ;;  %v2543_v17 = vld [vmem:[%s5482_s13 + $0x30] sm:$0xff] }
 0x3cd   : > { %v2161_v13 = vpop.f32.mrf.mxu0 }
 0x3ce   : > { %v2168_v15 = vadd.f32 %v2161_v13, %v2053_v9  ;;  %v2183_v22 = vadd.f32 %v2179_v12, %v2167_v14  ;;  %v2186_v29 = vmax.f32 %v2182_v24, 0.0  ;;  %v2547_v9 = vld [vmem:[%s5482_s13 + $0x50] sm:$0xff]  ;;  %v2634_v13 = vld [vmem:[%s5482_s13 + $0xc8] sm:$0xff]  ;;  %v2545_v14 = vld [vmem:[%s5482_s13 + $0x40] sm:$0xff] }
 0x3cf   : > { %v2163_v19 = vpop.f32.mrf.mxu0  ;;  %v2628_v24 = vld [vmem:[%s5482_s13 + $0x98] sm:$0xff] }
 0x3d0   : > { %v2169_v20 = vadd.f32 %v2163_v19, %v2054_v16  ;;  %v2184_v21 = vadd.f32 %v2175_v18, %v2168_v15  ;;  %v2187_v27 = vmax.f32 %v2183_v22, 0.0  ;;  %v2544_v15 = vld [vmem:[%s5482_s13 + $0x38] sm:$0xff]  ;;  %v2631_v18 = vld [vmem:[%s5482_s13 + $0xb0] sm:$0xff]  ;;  %v2542_v19 = vld [vmem:[%s5482_s13 + $0x28] sm:$0xff] }
 0x3d1   : > { %v2632_v16 = vld [vmem:[%s5482_s13 + $0xb8] sm:$0xff]  ;;  %v2629_v22 = vld [vmem:[%s5482_s13 + $0xa0] sm:$0xff] }
 0x3d2   : > { %v2185_v23 = vadd.f32 %v2179_v12, %v2169_v20  ;;  %v2188_v26 = vmax.f32 %v2184_v21, 0.0  ;;  %v2633_v12 = vld [vmem:[%s5482_s13 + $0xc0] sm:$0xff]  ;;  %v2630_v20 = vld [vmem:[%s5482_s13 + $0xa8] sm:$0xff] }
 0x3d3   : > { %v2541_v21 = vld [vmem:[%s5482_s13 + $0x20] sm:$0xff] }
 0x3d4   : > { %v2189_v25 = vmax.f32 %v2185_v23, 0.0  ;;  %v2540_v23 = vld [vmem:[%s5482_s13 + $0x18] sm:$0xff] }
 0x3d6   : > { %3259 = vmatprep.subr.msk.mxu1 %vm2195_vm4, %v2189_v25 }
 0x3d7   : > { %3260 = vmatpush1.msk.msra.mxu1 %vm2195_vm4, %v2188_v26 }
 0x3d8   : > { %2232 = vmatprep.subr.mxu1 %v2187_v27 }
 0x3d9   : > { %2233 = vmatpush1.msra.mxu1 %v2186_v29 }
 0x3da   : > { %3261 = vmatmul.mubr.msk.f32.vlgmr.msra.gmra.mxu1 %vm2191_vm5, %v2190_v8  ;;  %3262 = vmatprep.subr.msk.mxu1 %vm2195_vm4, %v2189_v25  ;;  %v2539_v25 = vld [vmem:[%s5482_s13 + $0x10] sm:$0xff]  ;;  %v2537_v8 = vld [vmem:[%s5482_s13] sm:$0xff] }
 0x3db   : > { %3263 = vmatpush1.msk.msra.mxu1 %vm2195_vm4, %v2188_v26  ;;  %2341 = vmatprep.mubr.f32.mxu1 %v3746_v4  ;;  %v2627_v26 = vld [vmem:[%s5482_s13 + $0x90] sm:$0xff] }
 0x3dc   : > { %2307 = vmatprep.subr.mxu1 %v2187_v27  ;;  %v2538_v27 = vld [vmem:[%s5482_s13 + $0x8] sm:$0xff] }
 0x3dd   : > { %2308 = vmatpush1.msra.mxu1 %v2186_v29  ;;  %v2626_v29 = vld [vmem:[%s5482_s13 + $0x88] sm:$0xff] }
 0x3de   : > { %3264 = vmatmul.mubr.msk.f32.vlgmr.msra.gmra.mxu1 %vm2191_vm5, %v2273_v50  ;;  %2373 = vmatprep.subr.mxu1 %v3746_v4  ;;  %v2625_v50 = vld [vmem:[%s5482_s13 + $0x80] sm:$0xff] }
 0x3df   : > { %2374 = vmatpush1.msra.mxu1 %v2365_v1 }
 0x3e0   : > { %2375 = vmatprep.subr.mxu1 %v3746_v4 }
 0x3e1   : > { %2376 = vmatpush1.msra.mxu1 %v2364_v30 }
 0x3e2   : > { %2377 = vmatprep.subr.mxu1 %v3746_v4 }
 0x3e3   : > { %2378 = vmatpush1.msra.mxu1 %v2363_v32 }
 0x3e4   : > { %2379 = vmatprep.subr.mxu1 %v3746_v4 }
 0x3e5   : > { %2380 = vmatpush1.msra.mxu1 %v2362_v33 }
 0x3e6   : > { %2381 = vmatprep.subr.mxu1 %v3746_v4 }
 0x3e7   : > { %2382 = vmatpush1.msra.mxu1 %v2361_v34 }
 0x3e8   : > { %2383 = vmatprep.subr.mxu1 %v3746_v4 }
 0x3e9   : > { %2384 = vmatpush1.msra.mxu1 %v2360_v35  ;;  %v2728_v35 = vld [vmem:[%s5482_s13 + $0x178] sm:$0xff] }
 0x3ea   : > { %2385 = vmatprep.subr.mxu1 %v3746_v4 }
 0x3eb   : > { %2386 = vmatpush1.msra.mxu1 %v2359_v36  ;;  %v2816_v36 = vld [vmem:[%s5482_s13 + $0x1f8] sm:$0xff] }
 0x3ec   : > { %2387 = vmatprep.subr.mxu1 %v3746_v4 }
 0x3ed   : > { %2388 = vmatpush1.msra.mxu1 %v2358_v37 }
 0x3ee   : > { %2389 = vmatprep.subr.mxu1 %v3746_v4 }
 0x3ef   : > { %2390 = vmatpush1.msra.mxu1 %v2357_v38 }
 0x3f0   : > { %2391 = vmatprep.subr.mxu1 %v3746_v4 }
 0x3f1   : > { %2392 = vmatpush1.msra.mxu1 %v2356_v31  ;;  %v2727_v31 = vld [vmem:[%s5482_s13 + $0x170] sm:$0xff] }
 0x3f2   : > { %2393 = vmatprep.subr.mxu1 %v3746_v4 }
 0x3f3   : > { %2394 = vmatpush1.msra.mxu1 %v2355_v39  ;;  %v2815_v39 = vld [vmem:[%s5482_s13 + $0x1f0] sm:$0xff] }
 0x3f4   : > { %2395 = vmatprep.subr.mxu1 %v3746_v4 }
 0x3f5   : > { %2396 = vmatpush1.msra.mxu1 %v2354_v40  ;;  %v2726_v40 = vld [vmem:[%s5482_s13 + $0x168] sm:$0xff] }
 0x3f6   : > { %2397 = vmatprep.subr.mxu1 %v3746_v4 }
 0x3f7   : > { %2398 = vmatpush1.msra.mxu1 %v2353_v28  ;;  %v2814_v28 = vld [vmem:[%s5482_s13 + $0x1e8] sm:$0xff] }
 0x3f8   : > { %2399 = vmatprep.subr.mxu1 %v3746_v4 }
 0x3f9   : > { %2400 = vmatpush1.msra.mxu1 %v2352_v42  ;;  %v2725_v42 = vld [vmem:[%s5482_s13 + $0x160] sm:$0xff] }
 0x3fa   : > { %2401 = vmatprep.subr.mxu1 %v3746_v4 }
 0x3fb   : > { %2402 = vmatpush1.msra.mxu1 %v2351_v43  ;;  %v2813_v43 = vld [vmem:[%s5482_s13 + $0x1e0] sm:$0xff] }
 0x3fc   : > { %2403 = vmatprep.subr.mxu1 %v3746_v4 }
 0x3fd   : > { %2404 = vmatpush1.msra.mxu1 %v2350_v41  ;;  %v2724_v41 = vld [vmem:[%s5482_s13 + $0x158] sm:$0xff] }
 0x3fe   : > { %2429 = vmatprep.subr.mxu1 %v3746_v4 }
 0x3ff   : > { %2430 = vmatpush2.msra.mxu1 %v2369_v45  ;;  %v2723_v45 = vld [vmem:[%s5482_s13 + $0x150] sm:$0xff] }
 0x400   : > { %2431 = vmatprep.subr.mxu1 %v3746_v4 }
 0x401   : > { %2432 = vmatpush2.msra.mxu1 %v2368_v47  ;;  %v2722_v47 = vld [vmem:[%s5482_s13 + $0x148] sm:$0xff] }
 0x402   : > { %2433 = vmatprep.subr.mxu1 %v3746_v4 }
 0x403   : > { %2434 = vmatpush2.msra.mxu1 %v2367_v49  ;;  %v2721_v49 = vld [vmem:[%s5482_s13 + $0x140] sm:$0xff] }
 0x404   : > { %2435 = vmatprep.subr.mxu1 %v3746_v4 }
 0x405   : > { %2436 = vmatpush2.msra.mxu1 %v2366_v52  ;;  %v2720_v52 = vld [vmem:[%s5482_s13 + $0x138] sm:$0xff] }
 0x406   : > { %3390 = vmatprep.subr.mxu1 %v3746_v4 }
 0x49a   : > { %v2268_v54 = vpop.f32.mrf.mxu1 }
 0x49c   : > { %v2270_v55 = vpop.f32.mrf.mxu1 }
 0x49e   : > { %v2343_v56 = vpop.f32.mrf.mxu1 }
 0x49f   : > { %v2348_v59 = vmax.f32 %v2268_v54, %v2343_v56  ;;  %v2719_v54 = vld [vmem:[%s5482_s13 + $0x130] sm:$0xff]  ;;  %v2718_v56 = vld [vmem:[%s5482_s13 + $0x128] sm:$0xff] }
 0x4a0   : > { %v2345_v57 = vpop.f32.mrf.mxu1 }
 0x4a1   : > { %v2349_v58 = vmax.f32 %v2270_v55, %v2345_v57  ;;  %v2807_v55 = vld [vmem:[%s5482_s13 + $0x1b0] sm:$0xff]  ;;  %v2806_v57 = vld [vmem:[%s5482_s13 + $0x1a8] sm:$0xff] }
 0x4a3   : > { %3265 = vmatprep.mubr.msk.f32.mxu1 %vm624_vm0, %v2349_v58  ;;  %3266 = vmatprep.mubr.msk.f32.mxu0 %vm624_vm0, %v2349_v58  ;;  %v2717_v58 = vld [vmem:[%s5482_s13 + $0x120] sm:$0xff] }
 0x4a4   : > { %2438 = vmatmul.mubr.f32.vlgmr.msra.gmra.mxu1 %v2348_v59  ;;  %2528 = vmatmul.mubr.f32.vlgmr.msra.gmra.mxu0 %v2348_v59  ;;  %v2805_v59 = vld [vmem:[%s5482_s13 + $0x1a0] sm:$0xff] }
 0x4a5   : > { %3391 = vmatpush3.msra.mxu1 %v2552_v60  ;;  %3426 = vmatpush3.msra.mxu0 %v2640_v61  ;;  %v2716_v60 = vld [vmem:[%s5482_s13 + $0x118] sm:$0xff] }
 0x4a6   : > { %3392 = vmatprep.subr.mxu1 %v3746_v4  ;;  %3427 = vmatprep.subr.mxu0 %v3746_v4  ;;  %v2804_v61 = vld [vmem:[%s5482_s13 + $0x198] sm:$0xff] }
 0x4a7   : > { %3393 = vmatpush3.msra.mxu1 %v2551_v62  ;;  %3428 = vmatpush3.msra.mxu0 %v2639_v63  ;;  %v2715_v62 = vld [vmem:[%s5482_s13 + $0x110] sm:$0xff] }
 0x4a8   : > { %3394 = vmatprep.subr.mxu1 %v3746_v4  ;;  %3429 = vmatprep.subr.mxu0 %v3746_v4  ;;  %v2803_v63 = vld [vmem:[%s5482_s13 + $0x190] sm:$0xff] }
 0x4a9   : > { %3395 = vmatpush3.msra.mxu1 %v2550_v0  ;;  %3430 = vmatpush3.msra.mxu0 %v2638_v2  ;;  %v2714_v0 = vld [vmem:[%s5482_s13 + $0x108] sm:$0xff] }
 0x4aa   : > { %3396 = vmatprep.subr.mxu1 %v3746_v4  ;;  %3431 = vmatprep.subr.mxu0 %v3746_v4  ;;  %v2802_v2 = vld [vmem:[%s5482_s13 + $0x188] sm:$0xff] }
 0x4ab   : > { %3397 = vmatpush3.msra.mxu1 %v2549_v3  ;;  %3432 = vmatpush3.msra.mxu0 %v2637_v5  ;;  %v2713_v3 = vld [vmem:[%s5482_s13 + $0x100] sm:$0xff] }
 0x4ac   : > { %3398 = vmatprep.subr.mxu1 %v3746_v4  ;;  %3433 = vmatprep.subr.mxu0 %v3746_v4  ;;  %v2801_v5 = vld [vmem:[%s5482_s13 + $0x180] sm:$0xff] }
 0x4ad   : > { %3399 = vmatpush3.msra.mxu1 %v2548_v6  ;;  %3434 = vmatpush3.msra.mxu0 %v2636_v7 }
 0x4ae   : > { %3400 = vmatprep.subr.mxu1 %v3746_v4  ;;  %3435 = vmatprep.subr.mxu0 %v3746_v4 }
 0x4af   : > { %3401 = vmatpush3.msra.mxu1 %v2547_v9  ;;  %3436 = vmatpush3.msra.mxu0 %v2635_v10  ;;  %v2904_v9 = vld [vmem:[%s5482_s13 + $0x278] sm:$0xff]  ;;  %v2903_v10 = vld [vmem:[%s5482_s13 + $0x270] sm:$0xff] }
 0x4b0   : > { %3402 = vmatprep.subr.mxu1 %v3746_v4  ;;  %3437 = vmatprep.subr.mxu0 %v3746_v4 }
 0x4b1   : > { %3403 = vmatpush3.msra.mxu1 %v2546_v11  ;;  %3438 = vmatpush3.msra.mxu0 %v2634_v13  ;;  %v2902_v11 = vld [vmem:[%s5482_s13 + $0x268] sm:$0xff]  ;;  %v2901_v13 = vld [vmem:[%s5482_s13 + $0x260] sm:$0xff] }
 0x4b2   : > { %3404 = vmatprep.subr.mxu1 %v3746_v4  ;;  %3439 = vmatprep.subr.mxu0 %v3746_v4 }
 0x4b3   : > { %3405 = vmatpush3.msra.mxu1 %v2545_v14  ;;  %3440 = vmatpush3.msra.mxu0 %v2633_v12  ;;  %v2900_v14 = vld [vmem:[%s5482_s13 + $0x258] sm:$0xff]  ;;  %v2899_v12 = vld [vmem:[%s5482_s13 + $0x250] sm:$0xff] }
 0x4b4   : > { %3406 = vmatprep.subr.mxu1 %v3746_v4  ;;  %3441 = vmatprep.subr.mxu0 %v3746_v4 }
 0x4b5   : > { %3407 = vmatpush3.msra.mxu1 %v2544_v15  ;;  %3442 = vmatpush3.msra.mxu0 %v2632_v16  ;;  %v2898_v15 = vld [vmem:[%s5482_s13 + $0x248] sm:$0xff]  ;;  %v2897_v16 = vld [vmem:[%s5482_s13 + $0x240] sm:$0xff] }
 0x4b6   : > { %3408 = vmatprep.subr.mxu1 %v3746_v4  ;;  %3443 = vmatprep.subr.mxu0 %v3746_v4 }
 0x4b7   : > { %3409 = vmatpush3.msra.mxu1 %v2543_v17  ;;  %3444 = vmatpush3.msra.mxu0 %v2631_v18  ;;  %v2896_v17 = vld [vmem:[%s5482_s13 + $0x238] sm:$0xff]  ;;  %v2895_v18 = vld [vmem:[%s5482_s13 + $0x230] sm:$0xff] }
 0x4b8   : > { %3410 = vmatprep.subr.mxu1 %v3746_v4  ;;  %3445 = vmatprep.subr.mxu0 %v3746_v4 }
 0x4b9   : > { %3411 = vmatpush3.msra.mxu1 %v2542_v19  ;;  %3446 = vmatpush3.msra.mxu0 %v2630_v20  ;;  %v2894_v19 = vld [vmem:[%s5482_s13 + $0x228] sm:$0xff]  ;;  %v2893_v20 = vld [vmem:[%s5482_s13 + $0x220] sm:$0xff] }
 0x4ba   : > { %3412 = vmatprep.subr.mxu1 %v3746_v4  ;;  %3447 = vmatprep.subr.mxu0 %v3746_v4 }
 0x4bb   : > { %3413 = vmatpush3.msra.mxu1 %v2541_v21  ;;  %3448 = vmatpush3.msra.mxu0 %v2629_v22  ;;  %v2892_v21 = vld [vmem:[%s5482_s13 + $0x218] sm:$0xff]  ;;  %v2891_v22 = vld [vmem:[%s5482_s13 + $0x210] sm:$0xff] }
 0x4bc   : > { %3414 = vmatprep.subr.mxu1 %v3746_v4  ;;  %3449 = vmatprep.subr.mxu0 %v3746_v4 }
 0x4bd   : > { %3415 = vmatpush3.msra.mxu1 %v2540_v23  ;;  %3450 = vmatpush3.msra.mxu0 %v2628_v24  ;;  %v2890_v23 = vld [vmem:[%s5482_s13 + $0x208] sm:$0xff]  ;;  %v2889_v24 = vld [vmem:[%s5482_s13 + $0x200] sm:$0xff] }
 0x4be   : > { %3416 = vmatprep.subr.mxu1 %v3746_v4  ;;  %3451 = vmatprep.subr.mxu0 %v3746_v4 }
 0x4bf   : > { %3417 = vmatpush3.msra.mxu1 %v2539_v25  ;;  %3452 = vmatpush3.msra.mxu0 %v2627_v26  ;;  %v2992_v26 = vld [vmem:[%s5484_s15 + $0x78] sm:$0xff] }
 0x4c0   : > { %3418 = vmatprep.subr.mxu1 %v3746_v4  ;;  %3453 = vmatprep.subr.mxu0 %v3746_v4 }
 0x4c1   : > { %3419 = vmatpush3.msra.mxu1 %v2538_v27  ;;  %3454 = vmatpush3.msra.mxu0 %v2626_v29  ;;  %v2991_v27 = vld [vmem:[%s5484_s15 + $0x70] sm:$0xff]  ;;  %v2990_v29 = vld [vmem:[%s5484_s15 + $0x68] sm:$0xff] }
 0x4c2   : > { %3420 = vmatprep.subr.mxu1 %v3746_v4  ;;  %3455 = vmatprep.subr.mxu0 %v3746_v4 }
 0x4c3   : > { %3421 = vmatpush3.msra.mxu1 %v2537_v8  ;;  %3456 = vmatpush3.msra.mxu0 %v2625_v50  ;;  %v2989_v8 = vld [vmem:[%s5484_s15 + $0x60] sm:$0xff]  ;;  %v2988_v50 = vld [vmem:[%s5484_s15 + $0x58] sm:$0xff] }
 0x4c4   : > { %3422 = vmatprep.mubr.msk.f32.mxu1 %vm3747_vm6, %v3746_v4  ;;  %3457 = vmatprep.mubr.msk.f32.mxu0 %vm3747_vm6, %v3746_v4 }
 0x4c5   : > { %3460 = vmatprep.subr.mxu1 %v3746_v4  ;;  %3495 = vmatprep.subr.mxu0 %v3746_v4 }
 0x564   : > { %v2439_v1 = vpop.f32.mrf.mxu1  ;;  %v2529_v30 = vpop.f32.mrf.mxu0 }
 0x565   : > { %v2533_v32 = vmax.f32 %v2439_v1, %v2529_v30  ;;  %v2987_v1 = vld [vmem:[%s5484_s15 + $0x50] sm:$0xff]  ;;  %v2986_v30 = vld [vmem:[%s5484_s15 + $0x48] sm:$0xff] }
 0x566   : > { %v2441_v33 = vpop.f32.mrf.mxu1  ;;  %v2531_v34 = vpop.f32.mrf.mxu0 }
 0x567   : > { %2534 = vst [vmem:[#allocation3] sm:$0x1f] %v2533_v32  ;;  %v2985_v32 = vld [vmem:[%s5484_s15 + $0x40] sm:$0xff]  ;;  %v2984_v33 = vld [vmem:[%s5484_s15 + $0x38] sm:$0xff]  ;;  %v2983_v34 = vld [vmem:[%s5484_s15 + $0x30] sm:$0xff] }
 0x56e   : > { %v2536_v37 = vld [vmem:[#allocation3] sm:$0x1]  ;;  %v2624_v38 = vld [vmem:[#allocation3 + $0x1] sm:$0x1]  ;;  %v2712_v6 = vld [vmem:[#allocation3 + $0x2] sm:$0x1] }
 0x56f   : > { %3423 = vmatmul.mubr.f32.vlgmr.msra.gmra.mxu1 %v2536_v37  ;;  %3458 = vmatmul.mubr.f32.vlgmr.msra.gmra.mxu0 %v2624_v38  ;;  %v2800_v7 = vld [vmem:[#allocation3 + $0x3] sm:$0x1]  ;;  %v2888_v25 = vld [vmem:[#allocation3 + $0x4] sm:$0x1]  ;;  %v2980_v37 = vld [vmem:[%s5484_s15 + $0x18] sm:$0xff] }
 0x570   : > { %3461 = vmatpush3.msra.mxu1 %v2728_v35  ;;  %3496 = vmatpush3.msra.mxu0 %v2816_v36  ;;  %v2982_v35 = vld [vmem:[%s5484_s15 + $0x28] sm:$0xff]  ;;  %v2981_v36 = vld [vmem:[%s5484_s15 + $0x20] sm:$0xff]  ;;  %v2979_v38 = vld [vmem:[%s5484_s15 + $0x10] sm:$0xff] }
 0x571   : > { %3462 = vmatprep.subr.mxu1 %v3746_v4  ;;  %3497 = vmatprep.subr.mxu0 %v3746_v4 }
 0x572   : > { %3463 = vmatpush3.msra.mxu1 %v2727_v31  ;;  %3498 = vmatpush3.msra.mxu0 %v2815_v39  ;;  %v2978_v31 = vld [vmem:[%s5484_s15 + $0x8] sm:$0xff]  ;;  %v2977_v39 = vld [vmem:[%s5484_s15] sm:$0xff] }
 0x573   : > { %3464 = vmatprep.subr.mxu1 %v3746_v4  ;;  %3499 = vmatprep.subr.mxu0 %v3746_v4 }
 0x574   : > { %3465 = vmatpush3.msra.mxu1 %v2726_v40  ;;  %3500 = vmatpush3.msra.mxu0 %v2814_v28  ;;  %v3080_v40 = vld [vmem:[%s5486_s17 + $0x78] sm:$0xff]  ;;  %v3079_v28 = vld [vmem:[%s5486_s17 + $0x70] sm:$0xff] }
 0x575   : > { %3466 = vmatprep.subr.mxu1 %v3746_v4  ;;  %3501 = vmatprep.subr.mxu0 %v3746_v4 }
 0x576   : > { %3467 = vmatpush3.msra.mxu1 %v2725_v42  ;;  %3502 = vmatpush3.msra.mxu0 %v2813_v43  ;;  %v3078_v42 = vld [vmem:[%s5486_s17 + $0x68] sm:$0xff]  ;;  %v3077_v43 = vld [vmem:[%s5486_s17 + $0x60] sm:$0xff] }
 0x577   : > { %3468 = vmatprep.subr.mxu1 %v3746_v4  ;;  %3503 = vmatprep.subr.mxu0 %v3746_v4 }
 0x578   : > { %3469 = vmatpush3.msra.mxu1 %v2724_v41  ;;  %3504 = vmatpush3.msra.mxu0 %v2812_v44  ;;  %v3076_v41 = vld [vmem:[%s5486_s17 + $0x58] sm:$0xff]  ;;  %v3075_v44 = vld [vmem:[%s5486_s17 + $0x50] sm:$0xff] }
 0x579   : > { %3470 = vmatprep.subr.mxu1 %v3746_v4  ;;  %3505 = vmatprep.subr.mxu0 %v3746_v4 }
 0x57a   : > { %3471 = vmatpush3.msra.mxu1 %v2723_v45  ;;  %3506 = vmatpush3.msra.mxu0 %v2811_v46  ;;  %v3074_v45 = vld [vmem:[%s5486_s17 + $0x48] sm:$0xff]  ;;  %v3073_v46 = vld [vmem:[%s5486_s17 + $0x40] sm:$0xff] }
 0x57b   : > { %3472 = vmatprep.subr.mxu1 %v3746_v4  ;;  %3507 = vmatprep.subr.mxu0 %v3746_v4 }
 0x57c   : > { %3473 = vmatpush3.msra.mxu1 %v2722_v47  ;;  %3508 = vmatpush3.msra.mxu0 %v2810_v48  ;;  %v3072_v47 = vld [vmem:[%s5486_s17 + $0x38] sm:$0xff]  ;;  %v3071_v48 = vld [vmem:[%s5486_s17 + $0x30] sm:$0xff] }
 0x57d   : > { %3474 = vmatprep.subr.mxu1 %v3746_v4  ;;  %3509 = vmatprep.subr.mxu0 %v3746_v4 }
 0x57e   : > { %3475 = vmatpush3.msra.mxu1 %v2721_v49  ;;  %3510 = vmatpush3.msra.mxu0 %v2809_v51  ;;  %v3070_v49 = vld [vmem:[%s5486_s17 + $0x28] sm:$0xff]  ;;  %v3069_v51 = vld [vmem:[%s5486_s17 + $0x20] sm:$0xff] }
 0x57f   : > { %3476 = vmatprep.subr.mxu1 %v3746_v4  ;;  %3511 = vmatprep.subr.mxu0 %v3746_v4 }
 0x580   : > { %3477 = vmatpush3.msra.mxu1 %v2720_v52  ;;  %3512 = vmatpush3.msra.mxu0 %v2808_v53  ;;  %v3068_v52 = vld [vmem:[%s5486_s17 + $0x18] sm:$0xff] }
 0x581   : > { %3478 = vmatprep.subr.mxu1 %v3746_v4  ;;  %3513 = vmatprep.subr.mxu0 %v3746_v4 }
 0x582   : > { %3479 = vmatpush3.msra.mxu1 %v2719_v54  ;;  %3514 = vmatpush3.msra.mxu0 %v2807_v55 }
 0x583   : > { %3480 = vmatprep.subr.mxu1 %v3746_v4  ;;  %3515 = vmatprep.subr.mxu0 %v3746_v4 }
 0x584   : > { %3481 = vmatpush3.msra.mxu1 %v2718_v56  ;;  %3516 = vmatpush3.msra.mxu0 %v2806_v57 }
 0x585   : > { %3482 = vmatprep.subr.mxu1 %v3746_v4  ;;  %3517 = vmatprep.subr.mxu0 %v3746_v4 }
 0x586   : > { %3483 = vmatpush3.msra.mxu1 %v2717_v58  ;;  %3518 = vmatpush3.msra.mxu0 %v2805_v59 }
 0x587   : > { %3484 = vmatprep.subr.mxu1 %v3746_v4  ;;  %3519 = vmatprep.subr.mxu0 %v3746_v4 }
 0x588   : > { %3485 = vmatpush3.msra.mxu1 %v2716_v60  ;;  %3520 = vmatpush3.msra.mxu0 %v2804_v61  ;;  %v2535_v61 = vld [vmem:[%s5483_s14] sm:$0x1] }
 0x589   : > { %3486 = vmatprep.subr.mxu1 %v3746_v4  ;;  %3521 = vmatprep.subr.mxu0 %v3746_v4 }
 0x58a   : > { %3487 = vmatpush3.msra.mxu1 %v2715_v62  ;;  %3522 = vmatpush3.msra.mxu0 %v2803_v63 }
 0x58b   : > { %3488 = vmatprep.subr.mxu1 %v3746_v4  ;;  %3523 = vmatprep.subr.mxu0 %v3746_v4 }
 0x58c   : > { %3489 = vmatpush3.msra.mxu1 %v2714_v0  ;;  %3524 = vmatpush3.msra.mxu0 %v2802_v2 }
 0x58d   : > { %3490 = vmatprep.subr.mxu1 %v3746_v4  ;;  %3525 = vmatprep.subr.mxu0 %v3746_v4 }
 0x58e   : > { %3491 = vmatpush3.msra.mxu1 %v2713_v3  ;;  %3492 = vmatprep.mubr.msk.f32.mxu1 %vm3747_vm6, %v3746_v4 }
 0x58f   : > { %3526 = vmatpush3.msra.mxu0 %v2801_v5  ;;  %3527 = vmatprep.mubr.msk.f32.mxu0 %vm3747_vm6, %v3746_v4 }
 0x590   : > { %3493 = vmatmul.mubr.f32.vlgmr.msra.gmra.mxu1 %v2712_v6  ;;  %3528 = vmatmul.mubr.f32.vlgmr.msra.gmra.mxu0 %v2800_v7 }
 0x591   : > { %3530 = vmatprep.subr.mxu1 %v3746_v4  ;;  %3562 = vmatprep.mubr.msk.f32.mxu1 %vm3747_vm6, %v3746_v4 }
 0x592   : > { %3531 = vmatpush3.msra.mxu1 %v2904_v9  ;;  %3565 = vmatprep.subr.mxu0 %v3746_v4  ;;  %v3067_v9 = vld [vmem:[%s5486_s17 + $0x10] sm:$0xff] }
 0x593   : > { %3532 = vmatprep.subr.mxu1 %v3746_v4  ;;  %3597 = vmatprep.mubr.msk.f32.mxu0 %vm3747_vm6, %v3746_v4 }
 0x594   : > { %3533 = vmatpush3.msra.mxu1 %v2903_v10  ;;  %3566 = vmatpush3.msra.mxu0 %v2992_v26  ;;  %v3066_v10 = vld [vmem:[%s5486_s17 + $0x8] sm:$0xff] }
 0x595   : > { %3534 = vmatprep.subr.mxu1 %v3746_v4  ;;  %3567 = vmatprep.subr.mxu0 %v3746_v4 }
 0x596   : > { %3535 = vmatpush3.msra.mxu1 %v2902_v11  ;;  %3568 = vmatpush3.msra.mxu0 %v2991_v27  ;;  %v3065_v11 = vld [vmem:[%s5486_s17] sm:$0xff] }
 0x597   : > { %3536 = vmatprep.subr.mxu1 %v3746_v4  ;;  %3569 = vmatprep.subr.mxu0 %v3746_v4 }
 0x598   : > { %3537 = vmatpush3.msra.mxu1 %v2901_v13  ;;  %3570 = vmatpush3.msra.mxu0 %v2990_v29  ;;  %v2993_v13 = vld [vmem:[%s5485_s16] sm:$0x1] }
 0x599   : > { %3538 = vmatprep.subr.mxu1 %v3746_v4  ;;  %3571 = vmatprep.subr.mxu0 %v3746_v4 }
 0x59a   : > { %3539 = vmatpush3.msra.mxu1 %v2900_v14  ;;  %3572 = vmatpush3.msra.mxu0 %v2989_v8 }
 0x59b   : > { %3540 = vmatprep.subr.mxu1 %v3746_v4  ;;  %3573 = vmatprep.subr.mxu0 %v3746_v4 }
 0x59c   : > { %3541 = vmatpush3.msra.mxu1 %v2899_v12  ;;  %3574 = vmatpush3.msra.mxu0 %v2988_v50 }
 0x59d   : > { %3542 = vmatprep.subr.mxu1 %v3746_v4  ;;  %3575 = vmatprep.subr.mxu0 %v3746_v4 }
 0x59e   : > { %3543 = vmatpush3.msra.mxu1 %v2898_v15  ;;  %3576 = vmatpush3.msra.mxu0 %v2987_v1 }
 0x59f   : > { %3544 = vmatprep.subr.mxu1 %v3746_v4  ;;  %3577 = vmatprep.subr.mxu0 %v3746_v4 }
 0x5a0   : > { %3545 = vmatpush3.msra.mxu1 %v2897_v16  ;;  %3578 = vmatpush3.msra.mxu0 %v2986_v30 }
 0x5a1   : > { %3546 = vmatprep.subr.mxu1 %v3746_v4  ;;  %3579 = vmatprep.subr.mxu0 %v3746_v4 }
 0x5a2   : > { %3547 = vmatpush3.msra.mxu1 %v2896_v17  ;;  %3580 = vmatpush3.msra.mxu0 %v2985_v32  ;;  %v3081_v17 = vld [vmem:[%s5487_s18] sm:$0x1] }
 0x5a3   : > { %3548 = vmatprep.subr.mxu1 %v3746_v4  ;;  %3581 = vmatprep.subr.mxu0 %v3746_v4 }
 0x5a4   : > { %3549 = vmatpush3.msra.mxu1 %v2895_v18  ;;  %3582 = vmatpush3.msra.mxu0 %v2984_v33 }
 0x5a5   : > { %3550 = vmatprep.subr.mxu1 %v3746_v4  ;;  %3583 = vmatprep.subr.mxu0 %v3746_v4 }
 0x5a6   : > { %3551 = vmatpush3.msra.mxu1 %v2894_v19  ;;  %3584 = vmatpush3.msra.mxu0 %v2983_v34 }
 0x5a7   : > { %3552 = vmatprep.subr.mxu1 %v3746_v4  ;;  %3585 = vmatprep.subr.mxu0 %v3746_v4 }
 0x5a8   : > { %3553 = vmatpush3.msra.mxu1 %v2893_v20  ;;  %3586 = vmatpush3.msra.mxu0 %v2982_v35 }
 0x5a9   : > { %3554 = vmatprep.subr.mxu1 %v3746_v4  ;;  %3587 = vmatprep.subr.mxu0 %v3746_v4 }
 0x5aa   : > { %3555 = vmatpush3.msra.mxu1 %v2892_v21  ;;  %3588 = vmatpush3.msra.mxu0 %v2981_v36 }
 0x5ab   : > { %3556 = vmatprep.subr.mxu1 %v3746_v4  ;;  %3589 = vmatprep.subr.mxu0 %v3746_v4 }
 0x5ac   : > { %3557 = vmatpush3.msra.mxu1 %v2891_v22  ;;  %3590 = vmatpush3.msra.mxu0 %v2980_v37 }
 0x5ad   : > { %3558 = vmatprep.subr.mxu1 %v3746_v4  ;;  %3591 = vmatprep.subr.mxu0 %v3746_v4 }
 0x5ae   : > { %3559 = vmatpush3.msra.mxu1 %v2890_v23  ;;  %3592 = vmatpush3.msra.mxu0 %v2979_v38 }
 0x5af   : > { %3560 = vmatprep.subr.mxu1 %v3746_v4  ;;  %3593 = vmatprep.subr.mxu0 %v3746_v4 }
 0x5b0   : > { %3561 = vmatpush3.msra.mxu1 %v2889_v24  ;;  %3594 = vmatpush3.msra.mxu0 %v2978_v31 }
 0x5b1   : > { %3563 = vmatmul.mubr.f32.vlgmr.msra.gmra.mxu1 %v2888_v25  ;;  %3600 = vmatprep.subr.mxu1 %v3746_v4 }
 0x5b2   : > { %3632 = vmatprep.mubr.msk.f32.mxu1 %vm3747_vm6, %v3746_v4  ;;  %3595 = vmatprep.subr.mxu0 %v3746_v4 }
 0x5b3   : > { %3596 = vmatpush3.msra.mxu0 %v2977_v39  ;;  %3601 = vmatpush3.msra.mxu1 %v3080_v40 }
 0x5b4   : > { %3602 = vmatprep.subr.mxu1 %v3746_v4 }
 0x5b5   : > { %3603 = vmatpush3.msra.mxu1 %v3079_v28 }
 0x5b6   : > { %3604 = vmatprep.subr.mxu1 %v3746_v4 }
 0x5b7   : > { %3605 = vmatpush3.msra.mxu1 %v3078_v42 }
 0x5b8   : > { %3606 = vmatprep.subr.mxu1 %v3746_v4 }
 0x5b9   : > { %3607 = vmatpush3.msra.mxu1 %v3077_v43 }
 0x5ba   : > { %3608 = vmatprep.subr.mxu1 %v3746_v4 }
 0x5bb   : > { %3609 = vmatpush3.msra.mxu1 %v3076_v41 }
 0x5bc   : > { %3610 = vmatprep.subr.mxu1 %v3746_v4 }
 0x5bd   : > { %3611 = vmatpush3.msra.mxu1 %v3075_v44 }
 0x5be   : > { %3612 = vmatprep.subr.mxu1 %v3746_v4 }
 0x5bf   : > { %3613 = vmatpush3.msra.mxu1 %v3074_v45 }
 0x5c0   : > { %3614 = vmatprep.subr.mxu1 %v3746_v4 }
 0x5c1   : > { %3615 = vmatpush3.msra.mxu1 %v3073_v46 }
 0x5c2   : > { %3616 = vmatprep.subr.mxu1 %v3746_v4 }
 0x5c3   : > { %3617 = vmatpush3.msra.mxu1 %v3072_v47 }
 0x5c4   : > { %3618 = vmatprep.subr.mxu1 %v3746_v4 }
 0x5c5   : > { %3619 = vmatpush3.msra.mxu1 %v3071_v48 }
 0x5c6   : > { %3620 = vmatprep.subr.mxu1 %v3746_v4 }
 0x5c7   : > { %3621 = vmatpush3.msra.mxu1 %v3070_v49 }
 0x5c8   : > { %3622 = vmatprep.subr.mxu1 %v3746_v4 }
 0x5c9   : > { %3623 = vmatpush3.msra.mxu1 %v3069_v51 }
 0x5ca   : > { %3624 = vmatprep.subr.mxu1 %v3746_v4 }
 0x5cb   : > { %3625 = vmatpush3.msra.mxu1 %v3068_v52 }
 0x5cc   : > { %3626 = vmatprep.subr.mxu1 %v3746_v4 }
 0x5cd   : > { %3627 = vmatpush3.msra.mxu1 %v3067_v9 }
 0x5ce   : > { %3628 = vmatprep.subr.mxu1 %v3746_v4 }
 0x5cf   : > { %3629 = vmatpush3.msra.mxu1 %v3066_v10 }
 0x5d0   : > { %3630 = vmatprep.subr.mxu1 %v3746_v4 }
 0x5d1   : > { %3631 = vmatpush3.msra.mxu1 %v3065_v11 }
 0x62f   : > { %v2619_v53 = vpop.f32.mrf.mxu1  ;;  %v2707_v54 = vpop.f32.mrf.mxu0 }
 0x630   : > { %v2623_v62 = vadd.f32 %v2619_v53, %v2535_v61 }
 0x631   : > { %v3424_v55 = vpop.f32.mrf.mxu1  ;;  %v3459_v56 = vpop.f32.mrf.mxu0 }
 0x632   : > { %v2711_v63 = vadd.f32 %v2707_v54, %v2623_v62 }
 0x650   : > { %v2795_v57 = vpop.f32.mrf.mxu1  ;;  %v2883_v58 = vpop.f32.mrf.mxu0 }
 0x651   : > { %v2799_v0 = vadd.f32 %v2795_v57, %v2711_v63 }
 0x652   : > { %v3494_v59 = vpop.f32.mrf.mxu1  ;;  %v3529_v60 = vpop.f32.mrf.mxu0 }
 0x653   : > { %v2887_v2 = vadd.f32 %v2883_v58, %v2799_v0 }
 0x671   : > { %v2971_v3 = vpop.f32.mrf.mxu1 }
 0x672   : > { %v2975_v5 = vadd.f32 %v2971_v3, %v2887_v2 }
 0x673   : > { %v3564_v6 = vpop.f32.mrf.mxu1 }
 0x674   : > { %v2976_v7 = vmax.f32 %v2975_v5, 0.0 }
 0x676   : > { %3598 = vmatmul.mubr.f32.vlgmr.msra.gmra.mxu0 %v2976_v7 }
 0x736   : > { %v3060_v14 = vpop.f32.mrf.mxu0 }
 0x737   : > { %v3061_v12 = vadd.f32 %v3060_v14, %v2993_v13 }
 0x738   : > { %v3599_v15 = vpop.f32.mrf.mxu0 }
 0x739   : > { %v3064_v16 = vmax.f32 %v3061_v12, 0.0 }
 0x73b   : > { %3633 = vmatmul.mubr.f32.vlgmr.msra.gmra.mxu1 %v3064_v16 }
 0x7fb   : > { %v3148_v4 = vpop.f32.mrf.mxu1 }
 0x7fc   : > { %v3149_v18 = vadd.f32 %v3148_v4, %v3081_v17 }
 0x7fd   : > { %v3634_v19 = vpop.f32.mrf.mxu1 }
 0x7fe   : > { %3152 = vst [vmem:[%s594_s26] sm:$0x1] %v3149_v18 }
 0x7ff   : > { %3697 = shalt.err (!%p3694_p3)
}
 0x800   : > { %s3698_s21 = scalar_lea.hbm %s5434_s28, 16  ;;  %s3702_s24 = scalar_lea.hbm %s5519_s27, 32 }
 0x801   : > { %p3699_p4 = scmp.ne.s32.totalorder %s5434_s28, %s3698_s21  ;;  %p3703_p9 = scmp.lt.s32.totalorder %s5434_s28, %s5519_s27 }
 0x802   : > { %p3704_p10 = scmp.lt.s32.totalorder %s3702_s24, %s3698_s21 }
 0x803   : > { %p3700_p7 = pnand %p3699_p4, %p3887_p5 }
 0x804   : > { %p3705_p11 = por %p3704_p10, %p3703_p9 }
 0x805   : > { %p3701_p8 = pneg %p3700_p7 }
 0x807   : > { %p3706_p12 = pnand %p3705_p11, %p3701_p8 }
 0x809   : > { %3709 = shalt.err (!%p3706_p12)
}
 0x80a   : > { %3643 = dma.vmem_to_hbm [thread:$0]  (%p3887_p5), %s3167_s22, 16, %s5434_s28, %s3154_s2  }
 0x80b PF: > { %s5520_s4 = sld [smem:[#allocation9_spill]] }
 0x80c   : > { %s5521_s25 = sld [smem:[#allocation7_spill]] }
 0x811   : > { %p3649_p13 = scmp.ge.s32.totalorder %s5520_s4, 2 }
 0x812   : > { %s3178_s19 = sand.u32 1, %s5521_s25  }
 0x813   : > { %p3646_p0 = pnand %p3649_p13, %p3891_p6  ;;  %s3179_s23 = scalar_lea.sflag [#allocation5], %s3178_s19 }
 0x815   : > { %p3647_p1 = pneg %p3646_p0 }
 0x817   : > { %3727 = dma.done.wait (%p3647_p1), %s3179_s23, 16  }
 0x818   : > { %3729 = vsyncadd (%p3647_p1), %s3179_s23, 4294967280  ;;  %s5523_s21 = sld [smem:[#allocation10_spill]]  ;;  %s5526_s0 = smov %s3736_s30 }
 0x819   : > { %s5524_s26 = sld [smem:[#allocation8_spill]] }
 0x81a   : > { %s5525_s20 = sld [smem:[#allocation11_spill]] }
 0x81e   : > { %p29_p2 = scmp.ge.s32.totalorder %s5523_s21, 4  }
 0x81f   : > { %s5527_s30 = smov %s5524_s26 }
 0x820   :  { %31 = sbr.rel (!%p29_p2) target bundleno = 10 (0xa), region = 131 }
 0x825   :  { %3183 = vsyncpa [#allocation5], 1 }
 0x826   :  { %3185 = vsyncpa [#allocation5 + $0x1], 1 }

</bundles_post_ra>
